<compile_context>
chip_gen: v5e
topology: v5e:2x2
jax: 0.10.0
libtpu: 0.0.40
codegen_flags: <defaults>
</compile_context>

<pallas_src>
import math
from functools import partial

import jax
import jax.numpy as jnp
from jax import lax
from jax.experimental import pallas as pl
from jax.experimental.pallas import tpu as pltpu


# ----------------------------------------------------------------------------
# Fused encoder kernel: one grid step == one Attention layer.
# ----------------------------------------------------------------------------
def encoder_kernel(q_in_ref, k_in_ref, x_in_ref,
                   wq0_ref, bq0_ref, wk0_ref, bk0_ref,
                   wq_ref, wk_ref, wp_ref, bp_ref, gamma_ref, beta_ref,
                   x_out_ref, attn_out_ref,
                   q_s, k_s, x_s,
                   *, B, N, C, L, H, scale, eps, attn_layer, num_layers):
    l = pl.program_id(0)
    hd_q = L // H
    hd_v = C // H

    # ---- layer 0: fold the encoder-level linear_q / linear_k, load x -------
    @pl.when(l == 0)
    def _init():
        q0 = jnp.dot(
            q_in_ref[...].reshape(B * N, q_in_ref.shape[-1]).astype(jnp.bfloat16),
            wq0_ref[...], preferred_element_type=jnp.float32) + bq0_ref[...]
        k0 = jnp.dot(
            k_in_ref[...].reshape(B * N, k_in_ref.shape[-1]).astype(jnp.bfloat16),
            wk0_ref[...], preferred_element_type=jnp.float32) + bk0_ref[...]
        q_s[...] = q0.reshape(B, N, L)
        k_s[...] = k0.reshape(B, N, L)
        x_s[...] = x_in_ref[...]

    # ---- per-layer weights (leading layer dim selected by BlockSpec) -------
    wq = wq_ref[0]          # (L, L)  bf16
    wk = wk_ref[0]          # (L, L)  bf16
    wp = wp_ref[0]          # (C, C)  bf16
    bp = bp_ref[0]          # (1, C)  f32
    gamma = gamma_ref[0]    # (N, 1)  f32
    beta = beta_ref[0]      # (N, 1)  f32

    # ---- q/k head projections (no bias: qkv_bias=False) --------------------
    q_lin = jnp.dot(q_s[...].reshape(B * N, L).astype(jnp.bfloat16), wq,
                    preferred_element_type=jnp.float32)
    k_lin = jnp.dot(k_s[...].reshape(B * N, L).astype(jnp.bfloat16), wk,
                    preferred_element_type=jnp.float32)
    q3 = q_lin.reshape(B, N, L)
    k3 = k_lin.reshape(B, N, L)
    # layer outputs q,k == projected q,k (permute+reshape round-trip is identity)
    q_s[...] = q3
    k_s[...] = k3

    x_prev = x_s[...]                                    # (B, N, C)

    # ---- multi-head attention, batched over B per head ---------------------
    attn_heads = []
    head_outs = []
    for h in range(H):
        qh = q3[:, :, h * hd_q:(h + 1) * hd_q] * scale   # scale folded into q
        kh = k3[:, :, h * hd_q:(h + 1) * hd_q]           # (B, N, hd_q)
        vh = x_prev[:, :, h * hd_v:(h + 1) * hd_v]       # (B, N, hd_v)
        s = lax.dot_general(qh, kh, (((2,), (2,)), ((0,), (0,))),
                            preferred_element_type=jnp.float32)      # (B, N, N)
        s = s - jnp.max(s, axis=-1, keepdims=True)
        p = jnp.exp(s)
        attn_h = p * pl.reciprocal(jnp.sum(p, axis=-1, keepdims=True), approx=True)
        attn_heads.append(attn_h)
        head_outs.append(
            lax.dot_general(attn_h.astype(jnp.bfloat16), vh.astype(jnp.bfloat16),
                            (((2,), (1,)), ((0,), (0,))),
                            preferred_element_type=jnp.float32))     # (B, N, hd_v)

    # Attention map is only materialized for the layer that is returned.
    @pl.when(l == attn_layer)
    def _store_attn():
        attn_out_ref[...] = jnp.concatenate(
            [a.reshape(B, 1, N, N) for a in attn_heads], axis=1)

    x_new = x_prev + jnp.concatenate(head_outs, axis=-1)             # (B, N, C)

    # ---- BatchNorm1d(N), training mode, one-pass stats over (B, C) ---------
    inv_bc = 1.0 / float(B * C)
    s1 = jnp.sum(x_new, axis=2, keepdims=True)                       # (B, N, 1)
    s2 = jnp.sum(x_new * x_new, axis=2, keepdims=True)               # (B, N, 1)
    mean = jnp.sum(s1, axis=0) * inv_bc                              # (N, 1)
    ex2 = jnp.sum(s2, axis=0) * inv_bc                               # (N, 1)
    var = ex2 - mean * mean                                          # biased var
    inv_std = lax.rsqrt(var + eps)                                   # (N, 1)
    bn_scale = inv_std * gamma                                       # (N, 1)
    bn_shift = beta - mean * bn_scale                                # (N, 1)
    x_bn = x_new * bn_scale + bn_shift                               # (B, N, C)

    # ---- output projection --------------------------------------------------
    y = jnp.dot(x_bn.reshape(B * N, C).astype(jnp.bfloat16), wp,
                preferred_element_type=jnp.float32) + bp
    x_next = y.reshape(B, N, C)
    x_s[...] = x_next

    @pl.when(l == num_layers - 1)
    def _finalize():
        x_out_ref[...] = x_next


# ----------------------------------------------------------------------------
# Encoder_Blocks forward wrapper
# ----------------------------------------------------------------------------
def encoder_blocks_forward(q, k, x, params):
    B, N, qk_dim = q.shape
    C = x.shape[-1]
    L = params["linear_dim"]
    H = params["num_heads"]
    layers = params["layers"]
    num_layers = len(layers)
    scale = float(C // H) ** -0.5                 # head_dim = dim // num_heads
    attn_layer = 3 if num_layers > 3 else num_layers - 1

    # Stack per-layer weights so a single BlockSpec index_map streams layer l.
    wq_all = jnp.stack([lp["wq_t"] for lp in layers]).astype(jnp.bfloat16)  # (Ln,L,L)
    wk_all = jnp.stack([lp["wk_t"] for lp in layers]).astype(jnp.bfloat16)  # (Ln,L,L)
    wp_all = jnp.stack([lp["wp_t"] for lp in layers]).astype(jnp.bfloat16)  # (Ln,C,C)
    bp_all = jnp.stack([lp["bp"] for lp in layers])                         # (Ln,1,C)
    gamma_all = jnp.stack([lp["gamma"] for lp in layers])                   # (Ln,N,1)
    beta_all = jnp.stack([lp["beta"] for lp in layers])                     # (Ln,N,1)

    kernel = partial(encoder_kernel, B=B, N=N, C=C, L=L, H=H, scale=scale,
                     eps=1e-5, attn_layer=attn_layer, num_layers=num_layers)

    def fixed(shape):
        nd = len(shape)
        return pl.BlockSpec(shape, lambda l, _nd=nd: (0,) * _nd)

    def per_layer(shape):
        nd = len(shape)
        return pl.BlockSpec((1,) + tuple(shape[1:]),
                            lambda l, _nd=nd: (l,) + (0,) * (_nd - 1))

    in_specs = [
        fixed((B, N, qk_dim)),            # q_in
        fixed((B, N, qk_dim)),            # k_in
        fixed((B, N, C)),                 # x_in
        fixed((qk_dim, L)),               # linear_q weight^T
        fixed((1, L)),                    # linear_q bias
        fixed((qk_dim, L)),               # linear_k weight^T
        fixed((1, L)),                    # linear_k bias
        per_layer(wq_all.shape),          # q_matrix weight^T  (per layer)
        per_layer(wk_all.shape),          # k_matrix weight^T  (per layer)
        per_layer(wp_all.shape),          # proj weight^T      (per layer)
        per_layer(bp_all.shape),          # proj bias          (per layer)
        per_layer(gamma_all.shape),       # BN gamma           (per layer)
        per_layer(beta_all.shape),        # BN beta            (per layer)
    ]
    out_shape = (jax.ShapeDtypeStruct((B, N, C), jnp.float32),
                 jax.ShapeDtypeStruct((B, H, N, N), jnp.float32))
    out_specs = (fixed((B, N, C)), fixed((B, H, N, N)))
    scratch_shapes = [
        pltpu.VMEM((B, N, L), jnp.float32),   # q resident across layers
        pltpu.VMEM((B, N, L), jnp.float32),   # k resident across layers
        pltpu.VMEM((B, N, C), jnp.float32),   # x resident across layers
    ]

    x_out, attn_out = pl.pallas_call(
        kernel,
        out_shape=out_shape,
        grid=(num_layers,),
        in_specs=in_specs,
        out_specs=out_specs,
        scratch_shapes=scratch_shapes,
        compiler_params=pltpu.CompilerParams(
            dimension_semantics=("arbitrary",),      # layers are sequential
            vmem_limit_bytes=32 * 1024 * 1024),
    )(q, k, x,
      params["wq0_t"].astype(jnp.bfloat16), params["bq0"],
      params["wk0_t"].astype(jnp.bfloat16), params["bk0"],
      wq_all, wk_all, wp_all, bp_all, gamma_all, beta_all)

    # Matches PyTorch: attn_qk stays the scalar 0 unless layer index 3 exists.
    attn_qk = attn_out if num_layers > 3 else jnp.zeros((), jnp.float32)
    return x_out, attn_qk


# ----------------------------------------------------------------------------
# Deterministic parameter construction + demo run
# ----------------------------------------------------------------------------
def kaiming_normal(key, out_f, in_f):
    # torch.nn.init.kaiming_normal_: std = sqrt(2 / fan_in)
    return jax.random.normal(key, (out_f, in_f), jnp.float32) * math.sqrt(2.0 / in_f)


def build_params(key, qk_dim, dim, linear_dim, num_heads, num_layers, N):
    keys = jax.random.split(key, 4 + 3 * num_layers)
    wq0 = kaiming_normal(keys[0], linear_dim, qk_dim)
    wk0 = kaiming_normal(keys[1], linear_dim, qk_dim)
    bq0 = 0.01 * jax.random.normal(keys[2], (1, linear_dim), jnp.float32)
    bk0 = 0.01 * jax.random.normal(keys[3], (1, linear_dim), jnp.float32)

    layers = []
    ki = 4
    for _ in range(num_layers):
        wq = kaiming_normal(keys[ki], linear_dim, linear_dim); ki += 1
        wk = kaiming_normal(keys[ki], linear_dim, linear_dim); ki += 1
        wp = kaiming_normal(keys[ki], dim, dim); ki += 1
        layers.append(dict(
            wq_t=wq.T, wk_t=wk.T, wp_t=wp.T,
            bp=jnp.zeros((1, dim), jnp.float32),         # proj bias -> zeros
            gamma=jnp.ones((N, 1), jnp.float32),         # BN affine init
            beta=jnp.zeros((N, 1), jnp.float32),
        ))
    return dict(wq0_t=wq0.T, wk0_t=wk0.T, bq0=bq0, bk0=bk0,
                layers=layers, linear_dim=linear_dim, num_heads=num_heads)


if __name__ == "__main__":
    # Small shapes consistent with the module's forward.
    # NOTE: the original hardcodes BatchNorm1d(540) => N must be 540 there;
    # here we use N=8 and size the BN channel dim to N accordingly.
    B, N, qk_dim, dim, linear_dim, num_heads, num_layers = 2, 8, 16, 32, 32, 4, 4

    root = jax.random.PRNGKey(0)
    k_in, k_par = jax.random.split(root)
    kq, kk, kx = jax.random.split(k_in, 3)
    q_in = jax.random.normal(kq, (B, N, qk_dim), jnp.float32)
    k_inp = jax.random.normal(kk, (B, N, qk_dim), jnp.float32)
    x_in = jax.random.normal(kx, (B, N, dim), jnp.float32)

    params = build_params(k_par, qk_dim, dim, linear_dim, num_heads, num_layers, N)

    x_out, attn_qk = encoder_blocks_forward(q_in, k_inp, x_in, params)
    x_out = jax.block_until_ready(x_out)
    attn_qk = jax.block_until_ready(attn_qk)

    assert x_out.shape == (B, N, dim)
    assert attn_qk.shape == (B, num_heads, N, N)
    assert bool(jnp.all(jnp.isfinite(x_out)))
    # softmax rows sum to ~1 (EUP approx reciprocal => slightly relaxed tol)
    assert bool(jnp.allclose(jnp.sum(attn_qk, axis=-1), 1.0, atol=1e-2))
    print("KERNEL_OK")
</pallas_src>

<mosaic_0001>
module attributes {stable_mosaic.version = 11 : i64} {
  func.func @encoder_kernel(%arg0: i32, %arg1: memref<2x8x16xf32, #tpu.memory_space<vmem>>, %arg2: memref<2x8x16xf32, #tpu.memory_space<vmem>>, %arg3: memref<2x8x32xf32, #tpu.memory_space<vmem>>, %arg4: memref<16x32xbf16, #tpu.memory_space<vmem>>, %arg5: memref<1x32xf32, #tpu.memory_space<vmem>>, %arg6: memref<16x32xbf16, #tpu.memory_space<vmem>>, %arg7: memref<1x32xf32, #tpu.memory_space<vmem>>, %arg8: memref<1x32x32xbf16, #tpu.memory_space<vmem>>, %arg9: memref<1x32x32xbf16, #tpu.memory_space<vmem>>, %arg10: memref<1x32x32xbf16, #tpu.memory_space<vmem>>, %arg11: memref<1x1x32xf32, #tpu.memory_space<vmem>>, %arg12: memref<1x8x1xf32, #tpu.memory_space<vmem>>, %arg13: memref<1x8x1xf32, #tpu.memory_space<vmem>>, %arg14: memref<2x8x32xf32, #tpu.memory_space<vmem>>, %arg15: memref<2x4x8x8xf32, #tpu.memory_space<vmem>>, %arg16: memref<2x8x32xf32, #tpu.memory_space<vmem>>, %arg17: memref<2x8x32xf32, #tpu.memory_space<vmem>>, %arg18: memref<2x8x32xf32, #tpu.memory_space<vmem>>) attributes {dimension_semantics = [#tpu.dimension_semantics<arbitrary>], iteration_bounds = array<i64: 4>, scalar_prefetch = 0 : i64, scratch_operands = 3 : i64, tpu.core_type = #tpu.core_type<tc>, window_params = [{pipeline_mode = #tpu.pipeline_mode<synchronous>, transform_indices = @transform_0, window_bounds = array<i64: 2, 8, 16>}, {pipeline_mode = #tpu.pipeline_mode<synchronous>, transform_indices = @transform_1, window_bounds = array<i64: 2, 8, 16>}, {pipeline_mode = #tpu.pipeline_mode<synchronous>, transform_indices = @transform_2, window_bounds = array<i64: 2, 8, 32>}, {pipeline_mode = #tpu.pipeline_mode<synchronous>, transform_indices = @transform_3, window_bounds = array<i64: 16, 32>}, {pipeline_mode = #tpu.pipeline_mode<synchronous>, transform_indices = @transform_4, window_bounds = array<i64: 1, 32>}, {pipeline_mode = #tpu.pipeline_mode<synchronous>, transform_indices = @transform_5, window_bounds = array<i64: 16, 32>}, {pipeline_mode = #tpu.pipeline_mode<synchronous>, transform_indices = @transform_6, window_bounds = array<i64: 1, 32>}, {transform_indices = @transform_7, window_bounds = array<i64: 1, 32, 32>}, {transform_indices = @transform_8, window_bounds = array<i64: 1, 32, 32>}, {transform_indices = @transform_9, window_bounds = array<i64: 1, 32, 32>}, {transform_indices = @transform_10, window_bounds = array<i64: 1, 1, 32>}, {transform_indices = @transform_11, window_bounds = array<i64: 1, 8, 1>}, {transform_indices = @transform_12, window_bounds = array<i64: 1, 8, 1>}, {pipeline_mode = #tpu.pipeline_mode<synchronous>, transform_indices = @transform_13, window_bounds = array<i64: 2, 8, 32>}, {pipeline_mode = #tpu.pipeline_mode<synchronous>, transform_indices = @transform_14, window_bounds = array<i64: 2, 4, 8, 8>}]} {
    %c0_i32 = arith.constant 0 : i32
    %0 = arith.cmpi eq, %arg0, %c0_i32 : i32
    %1 = arith.extui %0 : i1 to i32
    %c0_i32_0 = arith.constant 0 : i32
    %2 = arith.cmpi ne, %1, %c0_i32_0 : i32
    scf.if %2 {
      %c0_68 = arith.constant 0 : index
      %c0_69 = arith.constant 0 : index
      %c0_70 = arith.constant 0 : index
      %144 = vector.load %arg1[%c0_68, %c0_69, %c0_70] : memref<2x8x16xf32, #tpu.memory_space<vmem>>, vector<2x8x16xf32>
      %145 = vector.shape_cast %144 : vector<2x8x16xf32> to vector<16x16xf32>
      %146 = arith.truncf %145 : vector<16x16xf32> to vector<16x16xbf16>
      %c0_71 = arith.constant 0 : index
      %c0_72 = arith.constant 0 : index
      %147 = vector.load %arg4[%c0_71, %c0_72] : memref<16x32xbf16, #tpu.memory_space<vmem>>, vector<16x32xbf16>
      %cst_73 = arith.constant dense<0.000000e+00> : vector<16x32xf32>
      %148 = tpu.matmul %146, %147, %cst_73 {dimension_numbers = #tpu.dot_dimension_numbers<[1], [0], [0], [1], [0, 0, 1, 1], [], []>} : vector<16x16xbf16>, vector<16x32xbf16>, vector<16x32xf32> -> vector<16x32xf32>
      %c0_74 = arith.constant 0 : index
      %c0_75 = arith.constant 0 : index
      %149 = vector.load %arg5[%c0_74, %c0_75] : memref<1x32xf32, #tpu.memory_space<vmem>>, vector<1x32xf32>
      %150 = vector.broadcast %149 : vector<1x32xf32> to vector<16x32xf32>
      %151 = arith.addf %148, %150 : vector<16x32xf32>
      %c0_76 = arith.constant 0 : index
      %c0_77 = arith.constant 0 : index
      %c0_78 = arith.constant 0 : index
      %152 = vector.load %arg2[%c0_76, %c0_77, %c0_78] : memref<2x8x16xf32, #tpu.memory_space<vmem>>, vector<2x8x16xf32>
      %153 = vector.shape_cast %152 : vector<2x8x16xf32> to vector<16x16xf32>
      %154 = arith.truncf %153 : vector<16x16xf32> to vector<16x16xbf16>
      %c0_79 = arith.constant 0 : index
      %c0_80 = arith.constant 0 : index
      %155 = vector.load %arg6[%c0_79, %c0_80] : memref<16x32xbf16, #tpu.memory_space<vmem>>, vector<16x32xbf16>
      %cst_81 = arith.constant dense<0.000000e+00> : vector<16x32xf32>
      %156 = tpu.matmul %154, %155, %cst_81 {dimension_numbers = #tpu.dot_dimension_numbers<[1], [0], [0], [1], [0, 0, 1, 1], [], []>} : vector<16x16xbf16>, vector<16x32xbf16>, vector<16x32xf32> -> vector<16x32xf32>
      %c0_82 = arith.constant 0 : index
      %c0_83 = arith.constant 0 : index
      %157 = vector.load %arg7[%c0_82, %c0_83] : memref<1x32xf32, #tpu.memory_space<vmem>>, vector<1x32xf32>
      %158 = vector.broadcast %157 : vector<1x32xf32> to vector<16x32xf32>
      %159 = arith.addf %156, %158 : vector<16x32xf32>
      %160 = vector.shape_cast %151 : vector<16x32xf32> to vector<2x8x32xf32>
      %c0_84 = arith.constant 0 : index
      %c0_85 = arith.constant 0 : index
      %c0_86 = arith.constant 0 : index
      %161 = vector.load %arg16[%c0_84, %c0_85, %c0_86] : memref<2x8x32xf32, #tpu.memory_space<vmem>>, vector<2x8x32xf32>
      tpu.vector_store %arg16[%c0_84, %c0_85, %c0_86], %160 {strides = array<i32>} : memref<2x8x32xf32, #tpu.memory_space<vmem>>, vector<2x8x32xf32>,
      %162 = vector.shape_cast %159 : vector<16x32xf32> to vector<2x8x32xf32>
      %c0_87 = arith.constant 0 : index
      %c0_88 = arith.constant 0 : index
      %c0_89 = arith.constant 0 : index
      %163 = vector.load %arg17[%c0_87, %c0_88, %c0_89] : memref<2x8x32xf32, #tpu.memory_space<vmem>>, vector<2x8x32xf32>
      tpu.vector_store %arg17[%c0_87, %c0_88, %c0_89], %162 {strides = array<i32>} : memref<2x8x32xf32, #tpu.memory_space<vmem>>, vector<2x8x32xf32>,
      %c0_90 = arith.constant 0 : index
      %c0_91 = arith.constant 0 : index
      %c0_92 = arith.constant 0 : index
      %164 = vector.load %arg3[%c0_90, %c0_91, %c0_92] : memref<2x8x32xf32, #tpu.memory_space<vmem>>, vector<2x8x32xf32>
      %c0_93 = arith.constant 0 : index
      %c0_94 = arith.constant 0 : index
      %c0_95 = arith.constant 0 : index
      %165 = vector.load %arg18[%c0_93, %c0_94, %c0_95] : memref<2x8x32xf32, #tpu.memory_space<vmem>>, vector<2x8x32xf32>
      tpu.vector_store %arg18[%c0_93, %c0_94, %c0_95], %164 {strides = array<i32>} : memref<2x8x32xf32, #tpu.memory_space<vmem>>, vector<2x8x32xf32>,
    } else {
    }
    %c0 = arith.constant 0 : index
    %c0_1 = arith.constant 0 : index
    %c0_2 = arith.constant 0 : index
    %3 = vector.load %arg8[%c0, %c0_1, %c0_2] : memref<1x32x32xbf16, #tpu.memory_space<vmem>>, vector<1x32x32xbf16>
    %4 = vector.shape_cast %3 : vector<1x32x32xbf16> to vector<32x32xbf16>
    %c0_3 = arith.constant 0 : index
    %c0_4 = arith.constant 0 : index
    %c0_5 = arith.constant 0 : index
    %5 = vector.load %arg9[%c0_3, %c0_4, %c0_5] : memref<1x32x32xbf16, #tpu.memory_space<vmem>>, vector<1x32x32xbf16>
    %6 = vector.shape_cast %5 : vector<1x32x32xbf16> to vector<32x32xbf16>
    %c0_6 = arith.constant 0 : index
    %c0_7 = arith.constant 0 : index
    %c0_8 = arith.constant 0 : index
    %7 = vector.load %arg10[%c0_6, %c0_7, %c0_8] : memref<1x32x32xbf16, #tpu.memory_space<vmem>>, vector<1x32x32xbf16>
    %8 = vector.shape_cast %7 : vector<1x32x32xbf16> to vector<32x32xbf16>
    %c0_9 = arith.constant 0 : index
    %c0_10 = arith.constant 0 : index
    %c0_11 = arith.constant 0 : index
    %9 = vector.load %arg11[%c0_9, %c0_10, %c0_11] : memref<1x1x32xf32, #tpu.memory_space<vmem>>, vector<1x1x32xf32>
    %10 = vector.shape_cast %9 : vector<1x1x32xf32> to vector<1x32xf32>
    %c0_12 = arith.constant 0 : index
    %c0_13 = arith.constant 0 : index
    %c0_14 = arith.constant 0 : index
    %11 = vector.load %arg12[%c0_12, %c0_13, %c0_14] : memref<1x8x1xf32, #tpu.memory_space<vmem>>, vector<1x8x1xf32>
    %12 = vector.shape_cast %11 : vector<1x8x1xf32> to vector<8x1xf32>
    %c0_15 = arith.constant 0 : index
    %c0_16 = arith.constant 0 : index
    %c0_17 = arith.constant 0 : index
    %13 = vector.load %arg13[%c0_15, %c0_16, %c0_17] : memref<1x8x1xf32, #tpu.memory_space<vmem>>, vector<1x8x1xf32>
    %14 = vector.shape_cast %13 : vector<1x8x1xf32> to vector<8x1xf32>
    %c0_18 = arith.constant 0 : index
    %c0_19 = arith.constant 0 : index
    %c0_20 = arith.constant 0 : index
    %15 = vector.load %arg16[%c0_18, %c0_19, %c0_20] : memref<2x8x32xf32, #tpu.memory_space<vmem>>, vector<2x8x32xf32>
    %16 = vector.shape_cast %15 : vector<2x8x32xf32> to vector<16x32xf32>
    %17 = arith.truncf %16 : vector<16x32xf32> to vector<16x32xbf16>
    %cst = arith.constant dense<0.000000e+00> : vector<16x32xf32>
    %18 = tpu.matmul %17, %4, %cst {dimension_numbers = #tpu.dot_dimension_numbers<[1], [0], [0], [1], [0, 0, 1, 1], [], []>} : vector<16x32xbf16>, vector<32x32xbf16>, vector<16x32xf32> -> vector<16x32xf32>
    %c0_21 = arith.constant 0 : index
    %c0_22 = arith.constant 0 : index
    %c0_23 = arith.constant 0 : index
    %19 = vector.load %arg17[%c0_21, %c0_22, %c0_23] : memref<2x8x32xf32, #tpu.memory_space<vmem>>, vector<2x8x32xf32>
    %20 = vector.shape_cast %19 : vector<2x8x32xf32> to vector<16x32xf32>
    %21 = arith.truncf %20 : vector<16x32xf32> to vector<16x32xbf16>
    %cst_24 = arith.constant dense<0.000000e+00> : vector<16x32xf32>
    %22 = tpu.matmul %21, %6, %cst_24 {dimension_numbers = #tpu.dot_dimension_numbers<[1], [0], [0], [1], [0, 0, 1, 1], [], []>} : vector<16x32xbf16>, vector<32x32xbf16>, vector<16x32xf32> -> vector<16x32xf32>
    %23 = vector.shape_cast %18 : vector<16x32xf32> to vector<2x8x32xf32>
    %24 = vector.shape_cast %22 : vector<16x32xf32> to vector<2x8x32xf32>
    %c0_25 = arith.constant 0 : index
    %c0_26 = arith.constant 0 : index
    %c0_27 = arith.constant 0 : index
    %25 = vector.load %arg16[%c0_25, %c0_26, %c0_27] : memref<2x8x32xf32, #tpu.memory_space<vmem>>, vector<2x8x32xf32>
    tpu.vector_store %arg16[%c0_25, %c0_26, %c0_27], %23 {strides = array<i32>} : memref<2x8x32xf32, #tpu.memory_space<vmem>>, vector<2x8x32xf32>,
    %c0_28 = arith.constant 0 : index
    %c0_29 = arith.constant 0 : index
    %c0_30 = arith.constant 0 : index
    %26 = vector.load %arg17[%c0_28, %c0_29, %c0_30] : memref<2x8x32xf32, #tpu.memory_space<vmem>>, vector<2x8x32xf32>
    tpu.vector_store %arg17[%c0_28, %c0_29, %c0_30], %24 {strides = array<i32>} : memref<2x8x32xf32, #tpu.memory_space<vmem>>, vector<2x8x32xf32>,
    %c0_31 = arith.constant 0 : index
    %c0_32 = arith.constant 0 : index
    %c0_33 = arith.constant 0 : index
    %27 = vector.load %arg18[%c0_31, %c0_32, %c0_33] : memref<2x8x32xf32, #tpu.memory_space<vmem>>, vector<2x8x32xf32>
    %28 = vector.extract_strided_slice %23 {offsets = [0, 0, 0], sizes = [2, 8, 8], strides = [1, 1, 1]} : vector<2x8x32xf32> to vector<2x8x8xf32>
    %cst_34 = arith.constant 0.353553385 : f32
    %29 = vector.broadcast %cst_34 : f32 to vector<2x8x8xf32>
    %30 = arith.mulf %28, %29 : vector<2x8x8xf32>
    %31 = vector.extract_strided_slice %24 {offsets = [0, 0, 0], sizes = [2, 8, 8], strides = [1, 1, 1]} : vector<2x8x32xf32> to vector<2x8x8xf32>
    %32 = vector.extract_strided_slice %27 {offsets = [0, 0, 0], sizes = [2, 8, 8], strides = [1, 1, 1]} : vector<2x8x32xf32> to vector<2x8x8xf32>
    %cst_35 = arith.constant dense<0.000000e+00> : vector<2x8x8xf32>
    %33 = tpu.matmul %30, %31, %cst_35 {dimension_numbers = #tpu.dot_dimension_numbers<[2], [2], [1], [1], [0, 0, 0, 1, 1, 1], [0], [0]>} : vector<2x8x8xf32>, vector<2x8x8xf32>, vector<2x8x8xf32> -> vector<2x8x8xf32>
    %cst_36 = arith.constant dense<0xFF800000> : vector<2x8xf32>
    %34 = vector.multi_reduction <maximumf>, %33, %cst_36 [2] : vector<2x8x8xf32> to vector<2x8xf32>
    %35 = vector.shape_cast %34 : vector<2x8xf32> to vector<2x8x1xf32>
    %36 = vector.broadcast %35 : vector<2x8x1xf32> to vector<2x8x8xf32>
    %37 = arith.subf %33, %36 : vector<2x8x8xf32>
    %38 = math.exp %37 : vector<2x8x8xf32>
    %cst_37 = arith.constant dense<0.000000e+00> : vector<2x8xf32>
    %39 = vector.multi_reduction <add>, %38, %cst_37 [2] : vector<2x8x8xf32> to vector<2x8xf32>
    %40 = vector.shape_cast %39 : vector<2x8xf32> to vector<2x8x1xf32>
    %41 = tpu.reciprocal %40 {approx = true} : vector<2x8x1xf32> -> vector<2x8x1xf32>
    %42 = vector.broadcast %41 : vector<2x8x1xf32> to vector<2x8x8xf32>
    %43 = arith.mulf %38, %42 : vector<2x8x8xf32>
    %44 = arith.truncf %43 : vector<2x8x8xf32> to vector<2x8x8xbf16>
    %45 = arith.truncf %32 : vector<2x8x8xf32> to vector<2x8x8xbf16>
    %cst_38 = arith.constant dense<0.000000e+00> : vector<2x8x8xf32>
    %46 = tpu.matmul %44, %45, %cst_38 {dimension_numbers = #tpu.dot_dimension_numbers<[2], [1], [1], [2], [0, 0, 0, 1, 1, 2], [0], [0]>} : vector<2x8x8xbf16>, vector<2x8x8xbf16>, vector<2x8x8xf32> -> vector<2x8x8xf32>
    %47 = vector.extract_strided_slice %23 {offsets = [0, 0, 8], sizes = [2, 8, 8], strides = [1, 1, 1]} : vector<2x8x32xf32> to vector<2x8x8xf32>
    %cst_39 = arith.constant 0.353553385 : f32
    %48 = vector.broadcast %cst_39 : f32 to vector<2x8x8xf32>
    %49 = arith.mulf %47, %48 : vector<2x8x8xf32>
    %50 = vector.extract_strided_slice %24 {offsets = [0, 0, 8], sizes = [2, 8, 8], strides = [1, 1, 1]} : vector<2x8x32xf32> to vector<2x8x8xf32>
    %51 = vector.extract_strided_slice %27 {offsets = [0, 0, 8], sizes = [2, 8, 8], strides = [1, 1, 1]} : vector<2x8x32xf32> to vector<2x8x8xf32>
    %cst_40 = arith.constant dense<0.000000e+00> : vector<2x8x8xf32>
    %52 = tpu.matmul %49, %50, %cst_40 {dimension_numbers = #tpu.dot_dimension_numbers<[2], [2], [1], [1], [0, 0, 0, 1, 1, 1], [0], [0]>} : vector<2x8x8xf32>, vector<2x8x8xf32>, vector<2x8x8xf32> -> vector<2x8x8xf32>
    %cst_41 = arith.constant dense<0xFF800000> : vector<2x8xf32>
    %53 = vector.multi_reduction <maximumf>, %52, %cst_41 [2] : vector<2x8x8xf32> to vector<2x8xf32>
    %54 = vector.shape_cast %53 : vector<2x8xf32> to vector<2x8x1xf32>
    %55 = vector.broadcast %54 : vector<2x8x1xf32> to vector<2x8x8xf32>
    %56 = arith.subf %52, %55 : vector<2x8x8xf32>
    %57 = math.exp %56 : vector<2x8x8xf32>
    %cst_42 = arith.constant dense<0.000000e+00> : vector<2x8xf32>
    %58 = vector.multi_reduction <add>, %57, %cst_42 [2] : vector<2x8x8xf32> to vector<2x8xf32>
    %59 = vector.shape_cast %58 : vector<2x8xf32> to vector<2x8x1xf32>
    %60 = tpu.reciprocal %59 {approx = true} : vector<2x8x1xf32> -> vector<2x8x1xf32>
    %61 = vector.broadcast %60 : vector<2x8x1xf32> to vector<2x8x8xf32>
    %62 = arith.mulf %57, %61 : vector<2x8x8xf32>
    %63 = arith.truncf %62 : vector<2x8x8xf32> to vector<2x8x8xbf16>
    %64 = arith.truncf %51 : vector<2x8x8xf32> to vector<2x8x8xbf16>
    %cst_43 = arith.constant dense<0.000000e+00> : vector<2x8x8xf32>
    %65 = tpu.matmul %63, %64, %cst_43 {dimension_numbers = #tpu.dot_dimension_numbers<[2], [1], [1], [2], [0, 0, 0, 1, 1, 2], [0], [0]>} : vector<2x8x8xbf16>, vector<2x8x8xbf16>, vector<2x8x8xf32> -> vector<2x8x8xf32>
    %66 = vector.extract_strided_slice %23 {offsets = [0, 0, 16], sizes = [2, 8, 8], strides = [1, 1, 1]} : vector<2x8x32xf32> to vector<2x8x8xf32>
    %cst_44 = arith.constant 0.353553385 : f32
    %67 = vector.broadcast %cst_44 : f32 to vector<2x8x8xf32>
    %68 = arith.mulf %66, %67 : vector<2x8x8xf32>
    %69 = vector.extract_strided_slice %24 {offsets = [0, 0, 16], sizes = [2, 8, 8], strides = [1, 1, 1]} : vector<2x8x32xf32> to vector<2x8x8xf32>
    %70 = vector.extract_strided_slice %27 {offsets = [0, 0, 16], sizes = [2, 8, 8], strides = [1, 1, 1]} : vector<2x8x32xf32> to vector<2x8x8xf32>
    %cst_45 = arith.constant dense<0.000000e+00> : vector<2x8x8xf32>
    %71 = tpu.matmul %68, %69, %cst_45 {dimension_numbers = #tpu.dot_dimension_numbers<[2], [2], [1], [1], [0, 0, 0, 1, 1, 1], [0], [0]>} : vector<2x8x8xf32>, vector<2x8x8xf32>, vector<2x8x8xf32> -> vector<2x8x8xf32>
    %cst_46 = arith.constant dense<0xFF800000> : vector<2x8xf32>
    %72 = vector.multi_reduction <maximumf>, %71, %cst_46 [2] : vector<2x8x8xf32> to vector<2x8xf32>
    %73 = vector.shape_cast %72 : vector<2x8xf32> to vector<2x8x1xf32>
    %74 = vector.broadcast %73 : vector<2x8x1xf32> to vector<2x8x8xf32>
    %75 = arith.subf %71, %74 : vector<2x8x8xf32>
    %76 = math.exp %75 : vector<2x8x8xf32>
    %cst_47 = arith.constant dense<0.000000e+00> : vector<2x8xf32>
    %77 = vector.multi_reduction <add>, %76, %cst_47 [2] : vector<2x8x8xf32> to vector<2x8xf32>
    %78 = vector.shape_cast %77 : vector<2x8xf32> to vector<2x8x1xf32>
    %79 = tpu.reciprocal %78 {approx = true} : vector<2x8x1xf32> -> vector<2x8x1xf32>
    %80 = vector.broadcast %79 : vector<2x8x1xf32> to vector<2x8x8xf32>
    %81 = arith.mulf %76, %80 : vector<2x8x8xf32>
    %82 = arith.truncf %81 : vector<2x8x8xf32> to vector<2x8x8xbf16>
    %83 = arith.truncf %70 : vector<2x8x8xf32> to vector<2x8x8xbf16>
    %cst_48 = arith.constant dense<0.000000e+00> : vector<2x8x8xf32>
    %84 = tpu.matmul %82, %83, %cst_48 {dimension_numbers = #tpu.dot_dimension_numbers<[2], [1], [1], [2], [0, 0, 0, 1, 1, 2], [0], [0]>} : vector<2x8x8xbf16>, vector<2x8x8xbf16>, vector<2x8x8xf32> -> vector<2x8x8xf32>
    %85 = vector.extract_strided_slice %23 {offsets = [0, 0, 24], sizes = [2, 8, 8], strides = [1, 1, 1]} : vector<2x8x32xf32> to vector<2x8x8xf32>
    %cst_49 = arith.constant 0.353553385 : f32
    %86 = vector.broadcast %cst_49 : f32 to vector<2x8x8xf32>
    %87 = arith.mulf %85, %86 : vector<2x8x8xf32>
    %88 = vector.extract_strided_slice %24 {offsets = [0, 0, 24], sizes = [2, 8, 8], strides = [1, 1, 1]} : vector<2x8x32xf32> to vector<2x8x8xf32>
    %89 = vector.extract_strided_slice %27 {offsets = [0, 0, 24], sizes = [2, 8, 8], strides = [1, 1, 1]} : vector<2x8x32xf32> to vector<2x8x8xf32>
    %cst_50 = arith.constant dense<0.000000e+00> : vector<2x8x8xf32>
    %90 = tpu.matmul %87, %88, %cst_50 {dimension_numbers = #tpu.dot_dimension_numbers<[2], [2], [1], [1], [0, 0, 0, 1, 1, 1], [0], [0]>} : vector<2x8x8xf32>, vector<2x8x8xf32>, vector<2x8x8xf32> -> vector<2x8x8xf32>
    %cst_51 = arith.constant dense<0xFF800000> : vector<2x8xf32>
    %91 = vector.multi_reduction <maximumf>, %90, %cst_51 [2] : vector<2x8x8xf32> to vector<2x8xf32>
    %92 = vector.shape_cast %91 : vector<2x8xf32> to vector<2x8x1xf32>
    %93 = vector.broadcast %92 : vector<2x8x1xf32> to vector<2x8x8xf32>
    %94 = arith.subf %90, %93 : vector<2x8x8xf32>
    %95 = math.exp %94 : vector<2x8x8xf32>
    %cst_52 = arith.constant dense<0.000000e+00> : vector<2x8xf32>
    %96 = vector.multi_reduction <add>, %95, %cst_52 [2] : vector<2x8x8xf32> to vector<2x8xf32>
    %97 = vector.shape_cast %96 : vector<2x8xf32> to vector<2x8x1xf32>
    %98 = tpu.reciprocal %97 {approx = true} : vector<2x8x1xf32> -> vector<2x8x1xf32>
    %99 = vector.broadcast %98 : vector<2x8x1xf32> to vector<2x8x8xf32>
    %100 = arith.mulf %95, %99 : vector<2x8x8xf32>
    %101 = arith.truncf %100 : vector<2x8x8xf32> to vector<2x8x8xbf16>
    %102 = arith.truncf %89 : vector<2x8x8xf32> to vector<2x8x8xbf16>
    %cst_53 = arith.constant dense<0.000000e+00> : vector<2x8x8xf32>
    %103 = tpu.matmul %101, %102, %cst_53 {dimension_numbers = #tpu.dot_dimension_numbers<[2], [1], [1], [2], [0, 0, 0, 1, 1, 2], [0], [0]>} : vector<2x8x8xbf16>, vector<2x8x8xbf16>, vector<2x8x8xf32> -> vector<2x8x8xf32>
    %c3_i32 = arith.constant 3 : i32
    %104 = arith.cmpi eq, %arg0, %c3_i32 : i32
    %105 = arith.extui %104 : i1 to i32
    %c0_i32_54 = arith.constant 0 : i32
    %106 = arith.cmpi ne, %105, %c0_i32_54 : i32
    scf.if %106 {
      %144 = vector.shape_cast %43 : vector<2x8x8xf32> to vector<2x1x8x8xf32>
      %145 = vector.shape_cast %62 : vector<2x8x8xf32> to vector<2x1x8x8xf32>
      %146 = vector.shape_cast %81 : vector<2x8x8xf32> to vector<2x1x8x8xf32>
      %147 = vector.shape_cast %100 : vector<2x8x8xf32> to vector<2x1x8x8xf32>
      %148 = tpu.concatenate %144, %145, %146, %147 in 1 : vector<2x1x8x8xf32>, vector<2x1x8x8xf32>, vector<2x1x8x8xf32>, vector<2x1x8x8xf32> -> vector<2x4x8x8xf32>
      %c0_68 = arith.constant 0 : index
      %c0_69 = arith.constant 0 : index
      %c0_70 = arith.constant 0 : index
      %c0_71 = arith.constant 0 : index
      %149 = vector.load %arg15[%c0_68, %c0_69, %c0_70, %c0_71] : memref<2x4x8x8xf32, #tpu.memory_space<vmem>>, vector<2x4x8x8xf32>
      tpu.vector_store %arg15[%c0_68, %c0_69, %c0_70, %c0_71], %148 {strides = array<i32>} : memref<2x4x8x8xf32, #tpu.memory_space<vmem>>, vector<2x4x8x8xf32>,
    } else {
    }
    %107 = tpu.concatenate %46, %65, %84, %103 in 2 : vector<2x8x8xf32>, vector<2x8x8xf32>, vector<2x8x8xf32>, vector<2x8x8xf32> -> vector<2x8x32xf32>
    %108 = arith.addf %27, %107 : vector<2x8x32xf32>
    %cst_55 = arith.constant dense<0.000000e+00> : vector<2x8xf32>
    %109 = vector.multi_reduction <add>, %108, %cst_55 [2] : vector<2x8x32xf32> to vector<2x8xf32>
    %110 = vector.shape_cast %109 : vector<2x8xf32> to vector<2x8x1xf32>
    %111 = arith.mulf %108, %108 : vector<2x8x32xf32>
    %cst_56 = arith.constant dense<0.000000e+00> : vector<2x8xf32>
    %112 = vector.multi_reduction <add>, %111, %cst_56 [2] : vector<2x8x32xf32> to vector<2x8xf32>
    %113 = vector.shape_cast %112 : vector<2x8xf32> to vector<2x8x1xf32>
    %cst_57 = arith.constant dense<0.000000e+00> : vector<8x1xf32>
    %114 = vector.multi_reduction <add>, %110, %cst_57 [0] : vector<2x8x1xf32> to vector<8x1xf32>
    %cst_58 = arith.constant 1.562500e-02 : f32
    %115 = vector.broadcast %cst_58 : f32 to vector<8x1xf32>
    %116 = arith.mulf %114, %115 : vector<8x1xf32>
    %cst_59 = arith.constant dense<0.000000e+00> : vector<8x1xf32>
    %117 = vector.multi_reduction <add>, %113, %cst_59 [0] : vector<2x8x1xf32> to vector<8x1xf32>
    %cst_60 = arith.constant 1.562500e-02 : f32
    %118 = vector.broadcast %cst_60 : f32 to vector<8x1xf32>
    %119 = arith.mulf %117, %118 : vector<8x1xf32>
    %120 = arith.mulf %116, %116 : vector<8x1xf32>
    %121 = arith.subf %119, %120 : vector<8x1xf32>
    %cst_61 = arith.constant 9.99999974E-6 : f32
    %122 = vector.broadcast %cst_61 : f32 to vector<8x1xf32>
    %123 = arith.addf %121, %122 : vector<8x1xf32>
    %124 = math.rsqrt %123 : vector<8x1xf32>
    %125 = arith.mulf %124, %12 : vector<8x1xf32>
    %126 = arith.mulf %116, %125 : vector<8x1xf32>
    %127 = arith.subf %14, %126 : vector<8x1xf32>
    %128 = vector.shape_cast %125 : vector<8x1xf32> to vector<1x8x1xf32>
    %129 = vector.broadcast %128 : vector<1x8x1xf32> to vector<2x8x32xf32>
    %130 = arith.mulf %108, %129 : vector<2x8x32xf32>
    %131 = vector.shape_cast %127 : vector<8x1xf32> to vector<1x8x1xf32>
    %132 = vector.broadcast %131 : vector<1x8x1xf32> to vector<2x8x32xf32>
    %133 = arith.addf %130, %132 : vector<2x8x32xf32>
    %134 = vector.shape_cast %133 : vector<2x8x32xf32> to vector<16x32xf32>
    %135 = arith.truncf %134 : vector<16x32xf32> to vector<16x32xbf16>
    %cst_62 = arith.constant dense<0.000000e+00> : vector<16x32xf32>
    %136 = tpu.matmul %135, %8, %cst_62 {dimension_numbers = #tpu.dot_dimension_numbers<[1], [0], [0], [1], [0, 0, 1, 1], [], []>} : vector<16x32xbf16>, vector<32x32xbf16>, vector<16x32xf32> -> vector<16x32xf32>
    %137 = vector.broadcast %10 : vector<1x32xf32> to vector<16x32xf32>
    %138 = arith.addf %136, %137 : vector<16x32xf32>
    %139 = vector.shape_cast %138 : vector<16x32xf32> to vector<2x8x32xf32>
    %c0_63 = arith.constant 0 : index
    %c0_64 = arith.constant 0 : index
    %c0_65 = arith.constant 0 : index
    %140 = vector.load %arg18[%c0_63, %c0_64, %c0_65] : memref<2x8x32xf32, #tpu.memory_space<vmem>>, vector<2x8x32xf32>
    tpu.vector_store %arg18[%c0_63, %c0_64, %c0_65], %139 {strides = array<i32>} : memref<2x8x32xf32, #tpu.memory_space<vmem>>, vector<2x8x32xf32>,
    %c3_i32_66 = arith.constant 3 : i32
    %141 = arith.cmpi eq, %arg0, %c3_i32_66 : i32
    %142 = arith.extui %141 : i1 to i32
    %c0_i32_67 = arith.constant 0 : i32
    %143 = arith.cmpi ne, %142, %c0_i32_67 : i32
    scf.if %143 {
      %c0_68 = arith.constant 0 : index
      %c0_69 = arith.constant 0 : index
      %c0_70 = arith.constant 0 : index
      %144 = vector.load %arg14[%c0_68, %c0_69, %c0_70] : memref<2x8x32xf32, #tpu.memory_space<vmem>>, vector<2x8x32xf32>
      tpu.vector_store %arg14[%c0_68, %c0_69, %c0_70], %139 {strides = array<i32>} : memref<2x8x32xf32, #tpu.memory_space<vmem>>, vector<2x8x32xf32>,
    } else {
    }
    return
  }
  func.func @transform_0(%arg0: i32) -> (i32, i32, i32) {
    %c0_i32 = arith.constant 0 : i32
    %c0_i32_0 = arith.constant 0 : i32
    %c0_i32_1 = arith.constant 0 : i32
    %c0_i32_2 = arith.constant 0 : i32
    return %c0_i32, %c0_i32_0, %c0_i32_1 : i32, i32, i32
  }
  func.func @transform_1(%arg0: i32) -> (i32, i32, i32) {
    %c0_i32 = arith.constant 0 : i32
    %c0_i32_0 = arith.constant 0 : i32
    %c0_i32_1 = arith.constant 0 : i32
    %c0_i32_2 = arith.constant 0 : i32
    return %c0_i32, %c0_i32_0, %c0_i32_1 : i32, i32, i32
  }
  func.func @transform_2(%arg0: i32) -> (i32, i32, i32) {
    %c0_i32 = arith.constant 0 : i32
    %c0_i32_0 = arith.constant 0 : i32
    %c0_i32_1 = arith.constant 0 : i32
    %c0_i32_2 = arith.constant 0 : i32
    return %c0_i32, %c0_i32_0, %c0_i32_1 : i32, i32, i32
  }
  func.func @transform_3(%arg0: i32) -> (i32, i32) {
    %c0_i32 = arith.constant 0 : i32
    %c0_i32_0 = arith.constant 0 : i32
    %c0_i32_1 = arith.constant 0 : i32
    return %c0_i32, %c0_i32_0 : i32, i32
  }
  func.func @transform_4(%arg0: i32) -> (i32, i32) {
    %c0_i32 = arith.constant 0 : i32
    %c0_i32_0 = arith.constant 0 : i32
    %c0_i32_1 = arith.constant 0 : i32
    return %c0_i32, %c0_i32_0 : i32, i32
  }
  func.func @transform_5(%arg0: i32) -> (i32, i32) {
    %c0_i32 = arith.constant 0 : i32
    %c0_i32_0 = arith.constant 0 : i32
    %c0_i32_1 = arith.constant 0 : i32
    return %c0_i32, %c0_i32_0 : i32, i32
  }
  func.func @transform_6(%arg0: i32) -> (i32, i32) {
    %c0_i32 = arith.constant 0 : i32
    %c0_i32_0 = arith.constant 0 : i32
    %c0_i32_1 = arith.constant 0 : i32
    return %c0_i32, %c0_i32_0 : i32, i32
  }
  func.func @transform_7(%arg0: i32) -> (i32, i32, i32) {
    %c0_i32 = arith.constant 0 : i32
    %c0_i32_0 = arith.constant 0 : i32
    %c0_i32_1 = arith.constant 0 : i32
    return %arg0, %c0_i32, %c0_i32_0 : i32, i32, i32
  }
  func.func @transform_8(%arg0: i32) -> (i32, i32, i32) {
    %c0_i32 = arith.constant 0 : i32
    %c0_i32_0 = arith.constant 0 : i32
    %c0_i32_1 = arith.constant 0 : i32
    return %arg0, %c0_i32, %c0_i32_0 : i32, i32, i32
  }
  func.func @transform_9(%arg0: i32) -> (i32, i32, i32) {
    %c0_i32 = arith.constant 0 : i32
    %c0_i32_0 = arith.constant 0 : i32
    %c0_i32_1 = arith.constant 0 : i32
    return %arg0, %c0_i32, %c0_i32_0 : i32, i32, i32
  }
  func.func @transform_10(%arg0: i32) -> (i32, i32, i32) {
    %c0_i32 = arith.constant 0 : i32
    %c0_i32_0 = arith.constant 0 : i32
    %c0_i32_1 = arith.constant 0 : i32
    return %arg0, %c0_i32, %c0_i32_0 : i32, i32, i32
  }
  func.func @transform_11(%arg0: i32) -> (i32, i32, i32) {
    %c0_i32 = arith.constant 0 : i32
    %c0_i32_0 = arith.constant 0 : i32
    %c0_i32_1 = arith.constant 0 : i32
    return %arg0, %c0_i32, %c0_i32_0 : i32, i32, i32
  }
  func.func @transform_12(%arg0: i32) -> (i32, i32, i32) {
    %c0_i32 = arith.constant 0 : i32
    %c0_i32_0 = arith.constant 0 : i32
    %c0_i32_1 = arith.constant 0 : i32
    return %arg0, %c0_i32, %c0_i32_0 : i32, i32, i32
  }
  func.func @transform_13(%arg0: i32) -> (i32, i32, i32) {
    %c0_i32 = arith.constant 0 : i32
    %c0_i32_0 = arith.constant 0 : i32
    %c0_i32_1 = arith.constant 0 : i32
    %c0_i32_2 = arith.constant 0 : i32
    return %c0_i32, %c0_i32_0, %c0_i32_1 : i32, i32, i32
  }
  func.func @transform_14(%arg0: i32) -> (i32, i32, i32, i32) {
    %c0_i32 = arith.constant 0 : i32
    %c0_i32_0 = arith.constant 0 : i32
    %c0_i32_1 = arith.constant 0 : i32
    %c0_i32_2 = arith.constant 0 : i32
    %c0_i32_3 = arith.constant 0 : i32
    return %c0_i32, %c0_i32_0, %c0_i32_1, %c0_i32_2 : i32, i32, i32, i32
  }
}

</mosaic_0001>

<bundles_post_ra>
// kernel: tpu_custom_call.1
= control target key start
LH: loop header
LB: loop body
LE: loop exit
PB: predicated region body
PF: predicated region fallthrough
CT: control target
= control target key end

     0   :  { %s2802_s0 = inlined_call_operand.hbm [shape: f32[2,8,16], index: 0, kind: input, shape index: {}]   ;;  %s2803_s1 = inlined_call_operand.hbm [shape: f32[2,8,16], index: 1, kind: input, shape index: {}]   ;;  %s2804_s2 = inlined_call_operand.hbm [shape: f32[2,8,32], index: 2, kind: input, shape index: {}]   ;;  %s2805_s3 = inlined_call_operand.hbm [shape: bf16[16,32], index: 3, kind: input, shape index: {}]   ;;  %s2806_s4 = inlined_call_operand.vmem [shape: f32[1,32], index: 4, kind: input, shape index: {}]   ;;  %s2807_s5 = inlined_call_operand.hbm [shape: bf16[16,32], index: 5, kind: input, shape index: {}]   ;;  %s2808_s6 = inlined_call_operand.vmem [shape: f32[1,32], index: 6, kind: input, shape index: {}]   ;;  %s2809_s7 = inlined_call_operand.vmem [shape: bf16[4,32,32], index: 7, kind: input, shape index: {}]   ;;  %s2810_s8 = inlined_call_operand.hbm [shape: bf16[4,32,32], index: 8, kind: input, shape index: {}]   ;;  %s2811_s9 = inlined_call_operand.hbm [shape: bf16[4,32,32], index: 9, kind: input, shape index: {}]   ;;  %s2812_s10 = inlined_call_operand.vmem [shape: f32[4,1,32], index: 10, kind: input, shape index: {}]   ;;  %s2813_s11 = inlined_call_operand.vmem [shape: f32[4,8,1], index: 11, kind: input, shape index: {}]   ;;  %s2814_s12 = inlined_call_operand.vmem [shape: f32[4,8,1], index: 12, kind: input, shape index: {}]   ;;  %s2815_s13 = inlined_call_operand.hbm [shape: f32[2,8,32], index: 13, kind: output, shape index: {0}]   ;;  %s2816_s14 = inlined_call_operand.hbm [shape: f32[2,4,8,8], index: 14, kind: output, shape index: {1}]  }
   0x1   :  { %2828 = sst [smem:[#allocation29_spill]] %s2802_s0 }
   0x2   :  { %2829 = sst [smem:[#allocation30_spill]] %s2803_s1 }
   0x3   :  { %2830 = sst [smem:[#allocation31_spill]] %s2805_s3 }
   0x4   :  { %2831 = sst [smem:[#allocation32_spill]] %s2806_s4 }
   0x5   :  { %2832 = sst [smem:[#allocation33_spill]] %s2808_s6 }
   0x6   :  { %2833 = sst [smem:[#allocation34_spill]] %s2810_s8 }
   0x7   :  { %2834 = sst [smem:[#allocation35_spill]] %s2815_s13 }
   0x8   :  { %2835 = sst [smem:[#allocation36_spill]] %s2816_s14 }
   0x9   :  { %20 = vsyncpa [#allocation6], 0 }
   0xa   :  { %21 = vsyncpa [#allocation9], 0 }
   0xb   :  { %22 = vsyncpa [#allocation12], 0 }
   0xc   :  { %23 = vsyncpa [#allocation15], 0 }
   0xd   :  { %25 = vsyncpa [#allocation15 + $0x1], 0 }
   0xe   :  { %26 = vsyncpa [#allocation7], 0 }
   0xf   :  { %27 = vsyncpa [#allocation19], 0  ;;  %s2340_s29 = smov 0   ;;  %s2342_s30 = smov 0  }
  0x10   :  { %s2344_s15 = smov 0   ;;  %s2346_s16 = smov 0  }
  0x11 LB: > { %2836 = sst [smem:[#allocation26_spill]] %s2240_s15  ;;  %s2361_s17 = sadd.s32 4294967295, %s2244_s16   ;;  %s2244_s16 = sphi %s2346_s16, %s2855_s16   ;;  %s2240_s15 = sphi %s2344_s15, %s2857_s15   ;;  %s2236_s30 = sphi %s2342_s30, %s2859_s30   ;;  %s2232_s29 = sphi %s2340_s29, %s2858_s29  }
  0x12   : > { %p1659_p0 = scmp.ge.s32.totalorder %s2244_s16, 1  ;;  %p227_p1 = scmp.eq.s32.totalorder %s2361_s17, 0 }
  0x13   : > { %p383_p2 = scmp.lt.s32.totalorder %s2244_s16, 5  ;;  %p1660_p3 = scmp.ne.s32.totalorder %s2361_s17, 0 }
  0x14   : > { %s2837_s1 = sld [smem:[#allocation30_spill]]  ;;  %s2246_s22 = smov [#allocation8]  }
  0x15   : > { %p2370_p4 = pnand %p1659_p0, %p383_p2  ;;  %s410_s23 = sshll.u32 %s2246_s22, 4  ;;  %s411_s23 = int_to_ptr.vmem [resolvable:$true] %s410_s23 }
  0x16   : > { %s2839_s3 = sld [smem:[#allocation31_spill]]  ;;  %s2247_s28 = smov [#allocation11]  }
  0x17   : > { %p1797_p5 = pneg %p2370_p4  ;;  %s438_s18 = sshll.u32 %s2247_s28, 4  ;;  %s439_s18 = int_to_ptr.vmem [resolvable:$true] %s438_s18 }
  0x18   : > { %s2817_s19 = smov 128   ;;  %s2819_s22 = smov 8  }
  0x19   : > { %p2381_p6 = pnand %p1797_p5, %p227_p1  ;;  %s2821_s24 = smov 64  }
  0x1a   : > { %s408_s20 = sshll.u32 %s2837_s1, 4  ;;  %s2823_s25 = smov 4   ;;  %s409_s20 = int_to_ptr.hbm [resolvable:$true] %s408_s20 }
  0x1b   : > { %1803 = dma.hbm_to_vmem [thread:$0]  (!%p2381_p6), %s409_s20, 256, %s411_s23, [#allocation9], %s2817_s19, %s2817_s19, %s2819_s22  }
  0x1c   : > { %s436_s26 = sshll.u32 %s2839_s3, 4  ;;  %s2396_s28 = sadd.s32 1, %s2244_s16   ;;  %s437_s26 = int_to_ptr.hbm [resolvable:$true] %s436_s26 }
  0x1d   : > { %1809 = dma.hbm_to_vmem [thread:$0]  (!%p2381_p6), %s437_s26, 128, %s439_s18, [#allocation12], %s2821_s24, %s2821_s24, %s2823_s25  }
  0x1e   : > { %2841 = sst [smem:[#allocation27_spill]] %s2396_s28  ;;  %s213_s1 = sadd.s32 1, %s2240_s15 }
  0x1f   : > { %s210_s3 = ssub.s32 %s2244_s16, %s2396_s28  ;;  %p220_p7 = scmp.ne.s32.totalorder %s2240_s15, %s2236_s30 }
  0x20   : > { %p211_p8 = scmp.eq.s32.totalorder %s210_s3, 0  ;;  %p221_p9 = scmp.eq.s32.totalorder %s2244_s16, 0 }
  0x21   : > { %p226_p10 = scmp.ne.s32.totalorder %s2236_s30, %s2232_s29  ;;  %p1825_p11 = scmp.lt.s32.totalorder %s2244_s16, 4 }
  0x22   : > { %s2408_s20 = scalar_select %p211_p8, %s2240_s15, %s213_s1  }
  0x23   : > { %p222_p12 = por %p221_p9, %p220_p7  ;;  %p2412_p13 = por %p227_p1, %p226_p10 }
  0x24   : > { %2842 = sst [smem:[#allocation28_spill]] %s2408_s20  ;;  %s480_s26 = sand.u32 1, %s2244_s16  }
  0x25   : > { %s482_s18 = sand.u32 1, %s2240_s15   ;;  %s1754_s22 = sshll.u32 %s2244_s16, 4 }
  0x26   : > { %s2418_s19 = sshll.u32 %s482_s18, 4  ;;  %s2844_s8 = sld [smem:[#allocation34_spill]] }
  0x27   : > { %s484_s29 = scalar_lea.vmem [#allocation14], %s2418_s19  ;;  %p2427_p0 = pnand %p1825_p11, %p222_p12 }
  0x28   : > { %s492_s28 = sshll.u32 %s484_s29, 4  ;;  %s511_s18 = scalar_lea.hbm %s2811_s9, %s1754_s22  ;;  %s493_s28 = int_to_ptr.vmem [resolvable:$true] %s492_s28 }
  0x29   : > { %s512_s13 = sshll.u32 %s511_s18, 4  ;;  %s2434_s6 = scalar_lea.sflag [#allocation15], %s480_s26  ;;  %s2453_s13 = int_to_ptr.hbm [resolvable:$true] %s512_s13 }
  0x2a   : > { %p1988_p5 = pneg %p2427_p0 }
  0x2c   : > { %s489_s25 = scalar_lea.hbm %s2844_s8, %s1754_s22  ;;  %s1991_s14 = scalar_lea.hbm %s2844_s8, 64 }
  0x2d   : > { %s490_s1 = sshll.u32 %s489_s25, 4  ;;  %s491_s1 = int_to_ptr.hbm [resolvable:$true] %s490_s1 }
  0x2e   : > { %s1984_s24 = sshra.s32 %s491_s1, 4  ;;  %s1985_s24 = int_to_ptr.hbm [resolvable:$true] %s1984_s24 }
  0x2f   : > { %s1986_s3 = scalar_lea.hbm %s1985_s24, 16  ;;  %p1992_p9 = scmp.lt.s32.totalorder %s1985_s24, %s2844_s8 }
  0x30   : > { %p1987_p2 = scmp.ne.s32.totalorder %s1985_s24, %s1986_s3  ;;  %p1993_p10 = scmp.lt.s32.totalorder %s1991_s14, %s1986_s3 }
  0x32   : > { %p1989_p7 = pnand %p1988_p5, %p1987_p2  ;;  %p1994_p11 = por %p1993_p10, %p1992_p9 }
  0x34   : > { %p1990_p8 = pneg %p1989_p7 }
  0x36   : > { %p1995_p12 = pnand %p1994_p11, %p1990_p8 }
  0x38   : > { %1998 = shalt.err (!%p1995_p12)
}
  0x39   : > { %s2846_s22 = smov 4   ;;  %s2847_s26 = smov 64  }
  0x3a   : > { %1816 = dma.hbm_to_vmem [thread:$0]  (!%p2427_p0), %s491_s1, 256, %s493_s28, %s2434_s6, %s2847_s26, %s2847_s26, %s2846_s22  }
  0x3b   : > { %s506_s18 = scalar_lea.vmem [#allocation16], %s2418_s19  ;;  %s2848_s0 = sld [smem:[#allocation29_spill]] }
  0x3c   : > { %s2456_s16 = sshll.u32 %s506_s18, 4  ;;  %s2252_s14 = smov [#allocation5]   ;;  %s515_s16 = int_to_ptr.vmem [resolvable:$true] %s2456_s16 }
  0x3d   : > { %s396_s15 = sshll.u32 %s2252_s14, 4  ;;  %s422_s28 = sshll.u32 %s2804_s2, 4  ;;  %s397_s15 = int_to_ptr.vmem [resolvable:$true] %s396_s15  ;;  %s423_s28 = int_to_ptr.hbm [resolvable:$true] %s422_s28 }
  0x3e   : > { %s2849_s19 = smov 8   ;;  %s2850_s1 = smov 128  }
  0x3f   : > { %s453_s3 = sshll.u32 %s2807_s5, 4  ;;  %s2254_s8 = smov [#allocation13]   ;;  %s454_s3 = int_to_ptr.hbm [resolvable:$true] %s453_s3 }
  0x40   : > { %s455_s14 = sshll.u32 %s2254_s8, 4  ;;  %s456_s14 = int_to_ptr.vmem [resolvable:$true] %s455_s14 }
  0x41   : > { %s394_s25 = sshll.u32 %s2848_s0, 4  ;;  %s2253_s0 = smov [#allocation10]   ;;  %s395_s25 = int_to_ptr.hbm [resolvable:$true] %s394_s25 }
  0x42   : > { %1800 = dma.hbm_to_vmem [thread:$0]  (!%p2381_p6), %s395_s25, 256, %s397_s15, [#allocation6], %s2850_s1, %s2850_s1, %s2849_s19  }
  0x43   : > { %s424_s4 = sshll.u32 %s2253_s0, 4  ;;  %s2104_s25 = sshra.s32 %s2453_s13, 4  ;;  %s425_s4 = int_to_ptr.vmem [resolvable:$true] %s424_s4  ;;  %s2105_s25 = int_to_ptr.hbm [resolvable:$true] %s2104_s25 }
  0x44   : > { %1806 = dma.hbm_to_vmem [thread:$0]  (!%p2381_p6), %s423_s28, 256, %s425_s4, [#allocation9], %s2850_s1, %s2850_s1, %s2849_s19  }
  0x45   : > { %1812 = dma.hbm_to_vmem [thread:$0]  (!%p2381_p6), %s454_s3, 128, %s456_s14, [#allocation12], %s2847_s26, %s2847_s26, %s2846_s22  }
  0x46   : > { %s2106_s15 = scalar_lea.hbm %s2105_s25, 16  ;;  %s2111_s4 = scalar_lea.hbm %s2811_s9, 64 }
  0x47   : > { %p2107_p2 = scmp.ne.s32.totalorder %s2105_s25, %s2106_s15  ;;  %p2112_p9 = scmp.lt.s32.totalorder %s2105_s25, %s2811_s9 }
  0x48   : > { %p2113_p10 = scmp.lt.s32.totalorder %s2111_s4, %s2106_s15 }
  0x49   : > { %p2109_p7 = pnand %p2107_p2, %p1988_p5 }
  0x4a   : > { %p2114_p11 = por %p2113_p10, %p2112_p9 }
  0x4b   : > { %p2110_p8 = pneg %p2109_p7 }
  0x4d   : > { %p2115_p12 = pnand %p2114_p11, %p2110_p8 }
  0x4f   : > { %2118 = shalt.err (!%p2115_p12)
}
  0x50   : > { %1819 = dma.hbm_to_vmem [thread:$0]  (!%p2427_p0), %s2453_s13, 256, %s515_s16, %s2434_s6, %s2847_s26, %s2847_s26, %s2846_s22  }
  0x51   : > { %546 = sbr.rel (%p2370_p4) target bundleno = 2017 (0x7e1), region = 72 }
  0x56   : > { %2207 = dma.done.wait (%p227_p1), [#allocation6], 256  }
  0x57   : > { %2209 = vsyncadd (%p227_p1), [#allocation6], 4294967040 }
  0x58   : > { %2211 = dma.done.wait (%p227_p1), [#allocation9], 512  }
  0x59   : > { %2213 = vsyncadd (%p227_p1), [#allocation9], 4294966784 }
  0x5a   : > { %2215 = dma.done.wait (%p227_p1), [#allocation12], 256  }
  0x5b   : > { %2217 = vsyncadd (%p227_p1), [#allocation12], 4294967040  ;;  %s573_s6 = sand.u32 1, %s2361_s17   ;;  %s575_s13 = sand.u32 1, %s2236_s30  }
  0x5c   : > { %s2516_s21 = sshll.u32 %s575_s13, 4  ;;  %s574_s27 = scalar_lea.sflag [#allocation15], %s573_s6 }
  0x5d   : > { %s577_s20 = scalar_lea.vmem [#allocation14], %s2516_s21 }
  0x5e   : > { %2219 = dma.done.wait (%p2412_p13), %s574_s27, 512  }
  0x5f   : > { %2221 = vsyncadd (%p2412_p13), %s574_s27, 4294966784  ;;  %p649_p4 = scmp.lt.s32.totalorder %s2361_s17, 3  ;;  %s2549_s28 = scalar_lea.vmem [#allocation16], %s2516_s21 }
  0x60   : > { %s2851_s13 = sld [smem:[#allocation32_spill]] (!%p1660_p3) }
  0x61   : > { %s2525_s22 = scalar_select %p649_p4, %s2361_s17, 3 }
  0x62   : > { %669 = sbr.rel (%p1660_p3) target bundleno = 245 (0xf5), region = 104  ;;  %s2852_s16 = sld [smem:[#allocation33_spill]] (!%p1660_p3) }
  0x63   : > { %s1756_s26 = sshll.u32 %s2525_s22, 4  ;;  %s656_s18 = scalar_lea.vmem %s2812_s10, %s2525_s22 }
  0x64   : > { %s2535_s8 = scalar_lea.vmem %s2809_s7, %s1756_s26  ;;  %s1682_s23 = sshll.u32 %s2525_s22, 3 }
  0x65   : > { %s2541_s15 = scalar_lea.vmem %s2813_s11, %s1682_s23  ;;  %s2546_s4 = scalar_lea.vmem %s2814_s12, %s1682_s23 }
  0x67   : > { %v1757_v0 = vld [vmem:[#allocation11] sm:$0xff]  ;;  %v1758_v1 = vld [vmem:[#allocation13] sm:$0xff]  ;;  %v670_v2 = vld [vmem:[#allocation5] sm:$0xff]  ;;  %vm685_vm0 = vcmask 130048   ;;  %vm735_vm1 = vcmask 261120  }
  0x68   : > { %v671_v3 = vld [vmem:[#allocation5 + $0x8] sm:$0xff]  ;;  %v703_v4 = vld [vmem:[#allocation8] sm:$0xff]  ;;  %v704_v5 = vld [vmem:[#allocation8 + $0x8] sm:$0xff]  ;;  %696 = vmatpush.bf16.msra.mxu0 %v1757_v0  ;;  %728 = vmatpush.bf16.msra.mxu1 %v1758_v1 }
  0x69   : > { %v672_v6 = vpack.c.bf16 %v671_v3, %v670_v2  ;;  %v705_v7 = vpack.c.bf16 %v704_v5, %v703_v4  ;;  %v740_v8 = vld [vmem:[#allocation10] sm:$0xff]  ;;  %v741_v9 = vld [vmem:[#allocation10 + $0x8] sm:$0xff]  ;;  %v1886_v10 = vld [vmem:[%s2851_s13] ss:$0 sm:$0xff] }
  0x6a   : > { %742 = vst.msk [vmem:[#allocation4] sm:$0xff] %vm735_vm1, %v740_v8  ;;  %v1887_v11 = vld [vmem:[%s2852_s16] ss:$0 sm:$0xff] }
  0x6b   : > { %1689 = vmatmul.msk.bf16.vlgmr.msra.gmra.mxu0 %vm685_vm0, %v672_v6  ;;  %1694 = vmatmul.msk.bf16.vlgmr.msra.gmra.mxu1 %vm685_vm0, %v705_v7  ;;  %743 = vst.msk [vmem:[#allocation4 + $0x8] sm:$0xff] %vm735_vm1, %v741_v9 }
  0xe8   : > { %v698_v12 = vpop.f32.mrf.mxu0  ;;  %v730_v13 = vpop.f32.mrf.mxu1 }
  0xe9   : > { %v699_v14 = vadd.f32 %v1886_v10, %v698_v12  ;;  %v731_v15 = vadd.f32 %v1887_v11, %v730_v13 }
  0xeb   : > { %736 = vst.msk [vmem:[#allocation2] sm:$0xff] %vm735_vm1, %v699_v14 }
  0xec   : > { %738 = vst.msk [vmem:[#allocation3] sm:$0xff] %vm735_vm1, %v731_v15 }
  0xf0   : > { %v700_v16 = vpop.f32.mrf.mxu0  ;;  %v732_v17 = vpop.f32.mrf.mxu1 }
  0xf1   : > { %v701_v18 = vadd.f32 %v1886_v10, %v700_v16  ;;  %v733_v19 = vadd.f32 %v1887_v11, %v732_v17 }
  0xf3   : > { %737 = vst.msk [vmem:[#allocation2 + $0x8] sm:$0xff] %vm735_vm1, %v701_v18 }
  0xf4   : > { %739 = vst.msk [vmem:[#allocation3 + $0x8] sm:$0xff] %vm735_vm1, %v733_v19 }
  0xf5 PF: > { %v1762_v20 = vld [vmem:[%s577_s20 + $0x8] sm:$0xff]  ;;  %v2569_v22 = vld [vmem:[%s2549_s28] sm:$0xf]  ;;  %v2572_v23 = vld [vmem:[%s2549_s28] sm:$0xf0]  ;;  %vm774_vm2 = vcmask 261120  }
  0xf6   : > { %v1760_v21 = vld [vmem:[%s2535_s8 + $0x8] sm:$0xff]  ;;  %816 = vmatpush.bf16.msra.mxu1 %v1762_v20  ;;  %v2585_v26 = vld [vmem:[%s656_s18] sm:$0x1]  ;;  %v792_v31 = vld [vmem:[#allocation3] sm:$0xff]  ;;  %vm832_vm3 = vcmask 64512   ;;  %s2255_s21 = smov 120  }
  0xf7   : > { %v2575_v24 = vld [vmem:[%s2549_s28 + $0x8] sm:$0xf]  ;;  %v2578_v25 = vld [vmem:[%s2549_s28 + $0x8] sm:$0xf0]  ;;  %v2588_v27 = vld [vmem:[%s2541_s15] sm:$0xff]  ;;  %784 = vmatpush.bf16.msra.mxu0 %v1760_v21  ;;  %s2257_s22 = smov 112  }
  0xf8   : > { %v2591_v28 = vld [vmem:[%s2546_s4] sm:$0xff]  ;;  %v2636_v60 = vld [vmem:[#allocation4 + $0x8] sm:$0xff]  ;;  %vm914_vm4 = vcmask 1043456   ;;  %p1737_p1 = scmp.ne.s32.totalorder %s2361_s17, 3 }
  0xf9   : > { %v1761_v29 = vld [vmem:[%s577_s20] sm:$0xff]  ;;  %s2256_s20 = smov 104   ;;  %v910_v0 = vpack.c.bf16 %v2636_v60, %v2636_v60 }
  0xfa   : > { %v1759_v30 = vld [vmem:[%s2535_s8] sm:$0xff]  ;;  %v760_v34 = vld [vmem:[#allocation2 + $0x8] sm:$0xff]  ;;  %817 = vmatpush.bf16.msra.mxu1 %v1761_v29 }
  0xfb   : > { %v793_v32 = vld [vmem:[#allocation3 + $0x8] sm:$0xff]  ;;  %v759_v33 = vld [vmem:[#allocation2] sm:$0xff]  ;;  %785 = vmatpush.bf16.msra.mxu0 %v1759_v30  ;;  %v1055_v5 = vunpack.c.l.b16 %v910_v0  ;;  %v935_v13 = vsel %vm914_vm4, %v910_v0, 0 }
  0xfc   : > { %v794_v35 = vpack.c.bf16 %v793_v32, %v792_v31  ;;  %v761_v36 = vpack.c.bf16 %v760_v34, %v759_v33  ;;  %v2625_v51 = vld [vmem:[#allocation4] sm:$0xff] }
  0xfd   : > { %v909_v52 = vpack.c.bf16 %v2625_v51, %v2625_v51  ;;  %v2642_v6 = vpack.c.b16 %v1055_v5, %v1055_v5 }
  0xfe   : > { %1712 = vmatmul.msk.bf16.vlgmr.msra.gmra.mxu1 %vm774_vm2, %v794_v35  ;;  %1703 = vmatmul.msk.bf16.vlgmr.msra.gmra.mxu0 %vm774_vm2, %v761_v36 }
  0xff   : > { %v1031_v53 = vunpack.c.l.b16 %v909_v52  ;;  %v916_v11 = vsel %vm914_vm4, %v909_v52, 0 }
 0x101   : > { %v2629_v54 = vpack.c.b16 %v1031_v53, %v1031_v53 }
 0x17b   : > { %v2598_v37 = vpop.f32.mrf.mxu1  ;;  %v787_v38 = vpop.f32.mrf.mxu0 }
 0x17c   : > { %826 = vst.msk [vmem:[#allocation3] sm:$0xff] %vm774_vm2, %v2598_v37  ;;  %952 = vrot.lane.b32.xlu0 %v2598_v37, %s2255_s21  ;;  %v2604_v39 = vmul.f32 0.35355338, %v787_v38  ;;  %1713 = vmatpush.xpose.msk.msra.mxu2 %vm832_vm3, %v2598_v37 }
 0x17d   : > { %824 = vst.msk [vmem:[#allocation2] sm:$0xff] %vm774_vm2, %v787_v38 }
 0x17f   : > { %1714 = vmatmul.msk.f32.vlgmr.msra.gmra.mxu2 %vm832_vm3, %v2604_v39 }
 0x180   : > { %925 = vmatpush.bf16.msrb.mxu2 %v916_v11 }
 0x183   : > { %v821_v40 = vpop.f32.mrf.mxu1  ;;  %v789_v41 = vpop.f32.mrf.mxu0 }
 0x184   : > { %827 = vst.msk [vmem:[#allocation3 + $0x8] sm:$0xff] %vm774_vm2, %v821_v40  ;;  %980 = vrot.lane.b32.xlu1 %v821_v40, %s2255_s21  ;;  %1715 = vmatpush.xpose.msk.msra.mxu3 %vm832_vm3, %v821_v40  ;;  %v831_v42 = vmul.f32 0.35355338, %v789_v41 }
 0x185   : > { %950 = vrot.lane.b32.xlu0 %v2604_v39, %s2255_s21  ;;  %825 = vst.msk [vmem:[#allocation2 + $0x8] sm:$0xff] %vm774_vm2, %v789_v41 }
 0x187   : > { %1716 = vmatmul.msk.f32.vlgmr.msra.gmra.mxu3 %vm832_vm3, %v831_v42 }
 0x188   : > { %944 = vmatpush.bf16.msrb.mxu3 %v935_v13 }
 0x18c   : > { %978 = vrot.lane.b32.xlu1 %v831_v42, %s2255_s21 }
 0x1ee   : > { %v953_v43 = vpop.permute.xlu0 %952 }
 0x1ef   : > { %1719 = vmatpush.xpose.msk.msrb.mxu1 %vm832_vm3, %v953_v43 }
 0x1f6   : > { %v981_v44 = vpop.permute.xlu1 %980 }
 0x1f7   : > { %v951_v45 = vpop.permute.xlu0 %950  ;;  %1721 = vmatpush.xpose.msk.msra.mxu1 %vm832_vm3, %v981_v44 }
 0x1f8   : > { %1720 = vmatmul.msk.f32.vlgmr.msrb.gmra.mxu1 %vm832_vm3, %v951_v45 }
 0x1fe   : > { %v979_v46 = vpop.permute.xlu1 %978 }
 0x200   : > { %1722 = vmatmul.msk.f32.vlgmr.msra.gmra.mxu1 %vm832_vm3, %v979_v46 }
 0x202   : > { %v856_v47 = vpop.f32.mrf.mxu2 }
 0x203   : > { %v885_v48 = vsel %vm832_vm3, %v856_v47, -inf }
 0x204   : > { %886 = vmax.xlane.f32.xlu2 %v885_v48 }
 0x20a   : > { %v882_v49 = vpop.f32.mrf.mxu3 }
 0x20b   : > { %v888_v50 = vsel %vm832_vm3, %v882_v49, -inf }
 0x20c   : > { %889 = vmax.xlane.f32.xlu2 %v888_v50 }
 0x224   : > { %1033 = vrot.lane.b32.xlu2 %v2629_v54, %s2255_s21 }
 0x22c   : > { %1230 = vrot.lane.b32.xlu2 %v821_v40, %s2256_s20 }
 0x234   : > { %1228 = vrot.lane.b32.xlu2 %v831_v42, %s2256_s20 }
 0x275   : > { %v975_v55 = vpop.f32.mrf.mxu1 }
 0x276   : > { %v1006_v56 = vsel %vm832_vm3, %v975_v55, -inf }
 0x277   : > { %1007 = vmax.xlane.f32.xlu0 %v1006_v56  ;;  %v887_v57 = vpop.xlane.xlu2 %886 }
 0x278   : > { %v891_v58 = vsub.f32 %v856_v47, %v887_v57 }
 0x27a   : > { %v893_v59 = vmul.f32 1.442695, %v891_v58 }
 0x27c   : > { %1888 = vpow2.f32 %v893_v59 }
 0x27d   : > { %v1003_v61 = vpop.f32.mrf.mxu1 }
 0x27e   : > { %v1009_v62 = vsel %vm832_vm3, %v1003_v61, -inf }
 0x27f   : > { %1010 = vmax.xlane.f32.xlu1 %v1009_v62  ;;  %v890_v63 = vpop.xlane.xlu2 %889 }
 0x280   : > { %v892_v1 = vsub.f32 %v882_v49, %v890_v63 }
 0x282   : > { %v1889_v2 = vpop.eup %1888  ;;  %v895_v3 = vmul.f32 1.442695, %v892_v1 }
 0x283   : > { %v897_v4 = vsel %vm832_vm3, %v1889_v2, 0.0 }
 0x284   : > { %1890 = vpow2.f32 %v895_v3  ;;  %898 = vadd.xlane.f32.xlu2 %v897_v4 }
 0x287   : > { %v1034_v9 = vpop.permute.xlu2 %1033 }
 0x288   : > { %v1039_v10 = vsel %vm914_vm4, %v1034_v9, 0 }
 0x289   : > { %1048 = vmatpush.bf16.msra.mxu2 %v1039_v10 }
 0x28a   : > { %v1891_v7 = vpop.eup %1890 }
 0x28b   : > { %1057 = vrot.lane.b32.xlu0 %v2642_v6, %s2255_s21  ;;  %v900_v8 = vsel %vm832_vm3, %v1891_v7, 0.0 }
 0x28c   : > { %901 = vadd.xlane.f32.xlu2 %v900_v8 }
 0x28f   : > { %v1231_v12 = vpop.permute.xlu2 %1230 }
 0x293   : > { %1200 = vrot.lane.b32.xlu0 %v2604_v39, %s2256_s20 }
 0x297   : > { %v1229_v17 = vpop.permute.xlu2 %1228 }
 0x298   : > { %1202 = vrot.lane.b32.xlu1 %v2598_v37, %s2256_s20 }
 0x29b   : > { %1108 = vrot.lane.b32.xlu0 %v821_v40, %s2257_s22 }
 0x2a0   : > { %1080 = vrot.lane.b32.xlu1 %v2598_v37, %s2257_s22 }
 0x2a8   : > { %1106 = vrot.lane.b32.xlu1 %v831_v42, %s2257_s22 }
 0x2ea   : > { %v1008_v14 = vpop.xlane.xlu0 %1007 }
 0x2eb   : > { %v1012_v15 = vsub.f32 %v975_v55, %v1008_v14 }
 0x2ed   : > { %v1014_v16 = vmul.f32 1.442695, %v1012_v15 }
 0x2ef   : > { %1892 = vpow2.f32 %v1014_v16 }
 0x2f2   : > { %v1011_v18 = vpop.xlane.xlu1 %1010 }
 0x2f3   : > { %v1013_v19 = vsub.f32 %v1003_v61, %v1011_v18 }
 0x2f5   : > { %v1893_v20 = vpop.eup %1892  ;;  %v1016_v21 = vmul.f32 1.442695, %v1013_v19 }
 0x2f6   : > { %v1018_v29 = vsel %vm832_vm3, %v1893_v20, 0.0 }
 0x2f7   : > { %1894 = vpow2.f32 %v1016_v21  ;;  %1019 = vadd.xlane.f32.xlu2 %v1018_v29  ;;  %v899_v30 = vpop.xlane.xlu2 %898 }
 0x2f8   : > { %1896 = vrcp.f32 %v899_v30 }
 0x2fd   : > { %v1895_v31 = vpop.eup %1894  ;;  %v1058_v32 = vpop.permute.xlu0 %1057 }
 0x2fe   : > { %v1897_v33 = vpop.eup %1896  ;;  %v1063_v34 = vsel %vm914_vm4, %v1058_v32, 0  ;;  %v1021_v35 = vsel %vm832_vm3, %v1895_v31, 0.0 }
 0x2ff   : > { %v2661_v36 = vmul.f32 %v1897_v33, %v1889_v2  ;;  %1022 = vadd.xlane.f32.xlu2 %v1021_v35  ;;  %v902_v37 = vpop.xlane.xlu2 %901  ;;  %1072 = vmatpush.bf16.msra.mxu3 %v1063_v34 }
 0x300   : > { %1898 = vrcp.f32 %v902_v37 }
 0x301   : > { %v907_v38 = vpack.c.bf16 %v2661_v36, %v2661_v36 }
 0x303   : > { %1717 = vmatmul.msk.bf16.vlgmr.msrb.gmra.mxu2 %vm832_vm3, %v907_v38 }
 0x305   : > { %v1201_v40 = vpop.permute.xlu0 %1200 }
 0x306   : > { %v1899_v41 = vpop.eup %1898 }
 0x307   : > { %v2666_v42 = vmul.f32 %v1899_v41, %v1891_v7 }
 0x309   : > { %v908_v43 = vpack.c.bf16 %v2666_v42, %v2666_v42 }
 0x30a   : > { %v1203_v44 = vpop.permute.xlu1 %1202 }
 0x30b   : > { %1731 = vmatpush.xpose.msk.msrb.mxu2 %vm832_vm3, %v1203_v44  ;;  %1718 = vmatmul.msk.bf16.vlgmr.msrb.gmra.mxu3 %vm832_vm3, %v908_v43 }
 0x30c   : > { %1733 = vmatpush.xpose.msk.msrb.mxu3 %vm832_vm3, %v1231_v12 }
 0x30d   : > { %v1109_v45 = vpop.permute.xlu0 %1108 }
 0x30e   : > { %1727 = vmatpush.xpose.msk.msrb.mxu1 %vm832_vm3, %v1109_v45 }
 0x312   : > { %v1081_v46 = vpop.permute.xlu1 %1080 }
 0x313   : > { %1725 = vmatpush.xpose.msk.msrb.mxu0 %vm832_vm3, %v1081_v46 }
 0x317   : > { %1078 = vrot.lane.b32.xlu2 %v2604_v39, %s2257_s22 }
 0x31a   : > { %v1107_v47 = vpop.permute.xlu1 %1106 }
 0x31b   : > { %1728 = vmatmul.msk.f32.vlgmr.msrb.gmra.mxu1 %vm832_vm3, %v1107_v47 }
 0x36a   : > { %v1020_v48 = vpop.xlane.xlu2 %1019 }
 0x36b   : > { %1900 = vrcp.f32 %v1020_v48 }
 0x371   : > { %v1901_v49 = vpop.eup %1900 }
 0x372   : > { %v2678_v50 = vmul.f32 %v1901_v49, %v1893_v20  ;;  %v1023_v52 = vpop.xlane.xlu2 %1022 }
 0x373   : > { %1902 = vrcp.f32 %v1023_v52 }
 0x374   : > { %v1028_v53 = vpack.c.bf16 %v2678_v50, %v2678_v50 }
 0x376   : > { %1723 = vmatmul.msk.bf16.vlgmr.msra.gmra.mxu2 %vm832_vm3, %v1028_v53 }
 0x379   : > { %v1903_v55 = vpop.eup %1902 }
 0x37a   : > { %v2683_v56 = vmul.f32 %v1903_v55, %v1895_v31  ;;  %v1079_v57 = vpop.permute.xlu2 %1078 }
 0x37b   : > { %1726 = vmatmul.msk.f32.vlgmr.msrb.gmra.mxu0 %vm832_vm3, %v1079_v57 }
 0x37c   : > { %v1029_v39 = vpack.c.bf16 %v2683_v56, %v2683_v56 }
 0x37e   : > { %1724 = vmatmul.msk.bf16.vlgmr.msra.gmra.mxu3 %vm832_vm3, %v1029_v39 }
 0x386   : > { %1732 = vmatmul.msk.f32.vlgmr.msrb.gmra.mxu2 %vm832_vm3, %v1201_v40  ;;  %v2690_v58 = vpop.f32.mrf.mxu2 }
 0x38e   : > { %1734 = vmatmul.msk.f32.vlgmr.msrb.gmra.mxu3 %vm832_vm3, %v1229_v17  ;;  %v929_v59 = vpop.f32.mrf.mxu2  ;;  %v2693_v61 = vpop.f32.mrf.mxu3 }
 0x396   : > { %v948_v62 = vpop.f32.mrf.mxu3 }
 0x398   : > { %v1131_v8 = vpop.f32.mrf.mxu1 }
 0x399   : > { %v1137_v10 = vsel %vm832_vm3, %v1131_v8, -inf }
 0x3f8   : > { %v1103_v63 = vpop.f32.mrf.mxu0 }
 0x3f9   : > { %v2695_v0 = vpop.f32.mrf.mxu2  ;;  %v1134_v1 = vsel %vm832_vm3, %v1103_v63, -inf }
 0x3fa   : > { %1135 = vmax.xlane.f32.xlu1 %v1134_v1 }
 0x401   : > { %v1052_v2 = vpop.f32.mrf.mxu2  ;;  %v2698_v3 = vpop.f32.mrf.mxu3 }
 0x409   : > { %v1076_v4 = vpop.f32.mrf.mxu3  ;;  %v1225_v5 = vpop.f32.mrf.mxu2 }
 0x40a   : > { %v1256_v7 = vsel %vm832_vm3, %v1225_v5, -inf }
 0x40b   : > { %1257 = vmax.xlane.f32.xlu0 %v1256_v7 }
 0x411   : > { %v1253_v9 = vpop.f32.mrf.mxu3 }
 0x412   : > { %v1259_v11 = vsel %vm832_vm3, %v1253_v9, -inf }
 0x413   : > { %1138 = vmax.xlane.f32.xlu0 %v1137_v10  ;;  %1260 = vmax.xlane.f32.xlu2 %v1259_v11 }
 0x46d   : > { %v1136_v12 = vpop.xlane.xlu1 %1135 }
 0x46e   : > { %v1140_v13 = vsub.f32 %v1103_v63, %v1136_v12 }
 0x470   : > { %v1142_v14 = vmul.f32 1.442695, %v1140_v13 }
 0x472   : > { %1904 = vpow2.f32 %v1142_v14 }
 0x478   : > { %v1905_v15 = vpop.eup %1904 }
 0x479   : > { %v1146_v16 = vsel %vm832_vm3, %v1905_v15, 0.0 }
 0x47a   : > { %1147 = vadd.xlane.f32.xlu0 %v1146_v16 }
 0x47e   : > { %v1258_v17 = vpop.xlane.xlu0 %1257 }
 0x47f   : > { %v1262_v29 = vsub.f32 %v1225_v5, %v1258_v17 }
 0x481   : > { %v1264_v32 = vmul.f32 1.442695, %v1262_v29 }
 0x486   : > { %v1139_v18 = vpop.xlane.xlu0 %1138  ;;  %v1261_v19 = vpop.xlane.xlu2 %1260 }
 0x487   : > { %v1141_v20 = vsub.f32 %v1131_v8, %v1139_v18  ;;  %v1263_v21 = vsub.f32 %v1253_v9, %v1261_v19 }
 0x489   : > { %v1144_v30 = vmul.f32 1.442695, %v1141_v20  ;;  %v1266_v31 = vmul.f32 1.442695, %v1263_v21 }
 0x48b   : > { %1906 = vpow2.f32 %v1144_v30 }
 0x48c   : > { %1908 = vpow2.f32 %v1266_v31 }
 0x48d   : > { %1910 = vpow2.f32 %v1264_v32 }
 0x48e   : > { %1301 = vrot.lane.b32.xlu0 %v2642_v6, %s2256_s20 }
 0x491   : > { %v1907_v33 = vpop.eup %1906 }
 0x492   : > { %v1909_v34 = vpop.eup %1908  ;;  %v1149_v35 = vsel %vm832_vm3, %v1907_v33, 0.0 }
 0x493   : > { %1150 = vadd.xlane.f32.xlu2 %v1149_v35  ;;  %v1271_v37 = vsel %vm832_vm3, %v1909_v34, 0.0  ;;  %v1911_v38 = vpop.eup %1910 }
 0x494   : > { %1272 = vadd.xlane.f32.xlu1 %v1271_v37  ;;  %v1268_v40 = vsel %vm832_vm3, %v1911_v38, 0.0 }
 0x496   : > { %1179 = vrot.lane.b32.xlu0 %v2642_v6, %s2257_s22 }
 0x49b   : > { %1269 = vadd.xlane.f32.xlu2 %v1268_v40 }
 0x4ad   : > { %1280 = vrot.lane.b32.xlu1 %v2629_v54, %s2256_s20 }
 0x4b3   : > { %1158 = vrot.lane.b32.xlu2 %v2629_v54, %s2257_s22 }
 0x4ed   : > { %v1148_v41 = vpop.xlane.xlu0 %1147 }
 0x500   : > { %v1302_v43 = vpop.permute.xlu0 %1301 }
 0x501   : > { %v1307_v44 = vsel %vm914_vm4, %v1302_v43, 0 }
 0x502   : > { %1316 = vmatpush.bf16.msra.mxu3 %v1307_v44 }
 0x506   : > { %v1151_v45 = vpop.xlane.xlu2 %1150 }
 0x507   : > { %v1273_v46 = vpop.xlane.xlu1 %1272  ;;  %1912 = vrcp.f32 %v1151_v45 }
 0x508   : > { %1914 = vrcp.f32 %v1273_v46  ;;  %v1180_v6 = vpop.permute.xlu0 %1179 }
 0x509   : > { %v1185_v47 = vsel %vm914_vm4, %v1180_v6, 0  ;;  %1916 = vrcp.f32 %v1148_v41 }
 0x50a   : > { %1194 = vmatpush.bf16.msra.mxu1 %v1185_v47 }
 0x50d   : > { %v1913_v48 = vpop.eup %1912 }
 0x50e   : > { %v1915_v49 = vpop.eup %1914  ;;  %v1155_v52 = vmul.f32 %v1913_v48, %v1907_v33  ;;  %v1270_v53 = vpop.xlane.xlu2 %1269 }
 0x50f   : > { %v1277_v55 = vmul.f32 %v1915_v49, %v1909_v34  ;;  %v1917_v39 = vpop.eup %1916  ;;  %1918 = vrcp.f32 %v1270_v53 }
 0x510   : > { %v1157_v54 = vpack.c.bf16 %v1155_v52, %v1155_v52  ;;  %v1154_v59 = vmul.f32 %v1917_v39, %v1905_v15 }
 0x511   : > { %v1279_v57 = vpack.c.bf16 %v1277_v55, %v1277_v55 }
 0x512   : > { %1730 = vmatmul.msk.bf16.vlgmr.msra.gmra.mxu1 %vm832_vm3, %v1157_v54  ;;  %v1156_v1 = vpack.c.bf16 %v1154_v59, %v1154_v59 }
 0x513   : > { %1736 = vmatmul.msk.bf16.vlgmr.msra.gmra.mxu3 %vm832_vm3, %v1279_v57 }
 0x515   : > { %v1919_v2 = vpop.eup %1918 }
 0x516   : > { %v1159_v62 = vpop.permute.xlu2 %1158  ;;  %v1276_v4 = vmul.f32 %v1919_v2, %v1911_v38 }
 0x517   : > { %v1164_v63 = vsel %vm914_vm4, %v1159_v62, 0 }
 0x518   : > { %1173 = vmatpush.bf16.msra.mxu0 %v1164_v63  ;;  %v1278_v8 = vpack.c.bf16 %v1276_v4, %v1276_v4 }
 0x51b   : > { %1729 = vmatmul.msk.bf16.vlgmr.msra.gmra.mxu0 %vm832_vm3, %v1156_v1 }
 0x51f   : > { %v1281_v5 = vpop.permute.xlu1 %1280 }
 0x520   : > { %v1286_v7 = vsel %vm914_vm4, %v1281_v5, 0 }
 0x521   : > { %1295 = vmatpush.bf16.msra.mxu2 %v1286_v7 }
 0x524   : > { %1735 = vmatmul.msk.bf16.vlgmr.msra.gmra.mxu2 %vm832_vm3, %v1278_v8 }
 0x58f   : > { %v1196_v9 = vpop.f32.mrf.mxu1 }
 0x596   : > { %v1318_v10 = vpop.f32.mrf.mxu3 }
 0x597   : > { %v1198_v11 = vpop.f32.mrf.mxu1 }
 0x598   : > { %v1175_v12 = vpop.f32.mrf.mxu0 }
 0x59e   : > { %v1320_v13 = vpop.f32.mrf.mxu3 }
 0x5a0   : > { %v1177_v14 = vpop.f32.mrf.mxu0 }
 0x5a7   : > { %v1297_v15 = vpop.f32.mrf.mxu2 }
 0x5ab   : > { %1325 = sbr.rel (%p1737_p1) target bundleno = 1464 (0x5b8), region = 108 }
 0x5af   : > { %v1299_v16 = vpop.f32.mrf.mxu2 }
 0x5b0   : > { %1326 = vst.msk [vmem:[#allocation18] sm:$0xff] %vm832_vm3, %v2661_v36 }
 0x5b1   : > { %1327 = vst.msk [vmem:[#allocation18 + $0x8] sm:$0xff] %vm832_vm3, %v2678_v50 }
 0x5b2   : > { %1328 = vst.msk [vmem:[#allocation18 + $0x10] sm:$0xff] %vm832_vm3, %v1154_v59 }
 0x5b3   : > { %1329 = vst.msk [vmem:[#allocation18 + $0x18] sm:$0xff] %vm832_vm3, %v1276_v4 }
 0x5b4   : > { %1330 = vst.msk [vmem:[#allocation18 + $0x20] sm:$0xff] %vm832_vm3, %v2666_v42 }
 0x5b5   : > { %1331 = vst.msk [vmem:[#allocation18 + $0x28] sm:$0xff] %vm832_vm3, %v2683_v56 }
 0x5b6   : > { %1332 = vst.msk [vmem:[#allocation18 + $0x30] sm:$0xff] %vm832_vm3, %v1155_v52 }
 0x5b7   : > { %1333 = vst.msk [vmem:[#allocation18 + $0x38] sm:$0xff] %vm832_vm3, %v1277_v55 }
 0x5b8 PF: > { %s2258_s18 = smov 8   ;;  %s2259_s3 = smov 16   ;;  %vm1360_vm5 = vcmask 130048   ;;  %vm1363_vm6 = vcmask 195584   ;;  %v2261_v37 = vmov 0   ;;  %v1745_v63 = vor.u32 %v2578_v25, %v2575_v24 }
 0x5b9   : > { %1336 = vrot.lane.b32.xlu0 %v2695_v0, %s2258_s18  ;;  %1344 = vrot.lane.b32.xlu1 %v1175_v12, %s2259_s3  ;;  %s2260_s8 = smov 24   ;;  %v1741_v1 = vor.u32 %v2572_v23, %v2569_v22 }
 0x5ba   : > { %1352 = vrot.lane.b32.xlu2 %v1297_v15, %s2260_s8  ;;  %1920 = vset.pattern.permute.xlu0 %v2261_v37 }
 0x5bb   : > { %1921 = vset.pattern.permute.xlu1 %v2261_v37  ;;  %1441 = vmatpush.bf16.msrb.mxu0 %v1745_v63 }
 0x5bf   : > { %1442 = vmatpush.bf16.msrb.mxu0 %v1741_v1 }
 0x5c1   : > { %1338 = vrot.lane.b32.xlu0 %v2698_v3, %s2258_s18  ;;  %1346 = vrot.lane.b32.xlu1 %v1196_v9, %s2259_s3 }
 0x5c2   : > { %1354 = vrot.lane.b32.xlu2 %v1318_v10, %s2260_s8 }
 0x614   : > { %v1353_v36 = vpop.permute.xlu2 %1352 }
 0x61c   : > { %v1355_v3 = vpop.permute.xlu2 %1354 }
 0x62b   : > { %v1337_v42 = vpop.permute.xlu0 %1336  ;;  %v1345_v50 = vpop.permute.xlu1 %1344 }
 0x62c   : > { %v1358_v56 = vsel %vm832_vm3, %v2690_v58, %v1337_v42 }
 0x62d   : > { %v1361_v17 = vsel %vm1360_vm5, %v1358_v56, %v1345_v50 }
 0x62e   : > { %v1364_v0 = vsel %vm1363_vm6, %v1361_v17, %v1353_v36 }
 0x62f   : > { %v1366_v18 = vadd.f32 %v1364_v0, %v2625_v51 }
 0x631   : > { %v1368_v19 = vsel %vm774_vm2, %v1366_v18, 0.0  ;;  %v1374_v20 = vmul.f32 %v1366_v18, %v1366_v18 }
 0x632   : > { %1369 = vadd.xlane.f32.xlu0 %v1368_v19 }
 0x633   : > { %v1339_v21 = vpop.permute.xlu0 %1338  ;;  %v1347_v29 = vpop.permute.xlu1 %1346  ;;  %v1376_v30 = vsel %vm774_vm2, %v1374_v20, 0.0 }
 0x634   : > { %v1359_v31 = vsel %vm832_vm3, %v2693_v61, %v1339_v21  ;;  %1377 = vadd.xlane.f32.xlu2 %v1376_v30 }
 0x635   : > { %v1362_v58 = vsel %vm1360_vm5, %v1359_v31, %v1347_v29 }
 0x636   : > { %v1365_v32 = vsel %vm1363_vm6, %v1362_v58, %v1355_v3 }
 0x637   : > { %v1367_v33 = vadd.f32 %v1365_v32, %v2636_v60 }
 0x639   : > { %v1371_v51 = vsel %vm774_vm2, %v1367_v33, 0.0  ;;  %v1375_v34 = vmul.f32 %v1367_v33, %v1367_v33 }
 0x63a   : > { %1372 = vadd.xlane.f32.xlu1 %v1371_v51 }
 0x63b   : > { %v1379_v35 = vsel %vm774_vm2, %v1375_v34, 0.0 }
 0x63c   : > { %1380 = vadd.xlane.f32.xlu2 %v1379_v35 }
 0x6a5   : > { %v1370_v40 = vpop.xlane.xlu0 %1369 }
 0x6a7   : > { %v1378_v38 = vpop.xlane.xlu2 %1377 }
 0x6ad   : > { %v1373_v41 = vpop.xlane.xlu1 %1372 }
 0x6ae   : > { %v1382_v61 = vadd.f32 %v1373_v41, %v1370_v40 }
 0x6af   : > { %v1381_v43 = vpop.xlane.xlu2 %1380 }
 0x6b0   : > { %v1383_v44 = vmul.f32 0.015625, %v1382_v61  ;;  %v1384_v45 = vadd.f32 %v1381_v43, %v1378_v38 }
 0x6b2   : > { %v1386_v46 = vmul.f32 %v1383_v44, %v1383_v44  ;;  %v1385_v6 = vmul.f32 0.015625, %v1384_v45 }
 0x6b4   : > { %v1387_v60 = vsub.f32 %v1385_v6, %v1386_v46 }
 0x6b6   : > { %v1388_v47 = vadd.f32 1e-05, %v1387_v60 }
 0x6b8   : > { %1922 = vrsqrt.f32 %v1388_v47  ;;  %vm1395_vm8 = vweird.f32 %v1388_v47 }
 0x6be   : > { %v1923_v48 = vpop.eup %1922 }
 0x6bf   : > { %v1390_v49 = vmul.f32 %v1923_v48, %v1388_v47  ;;  %vm1396_vm7 = vweird.f32 %v1923_v48 }
 0x6c0   : > { %vm1397_vm9 = vmor %vm1395_vm8, %vm1396_vm7 }
 0x6c1   : > { %v1391_v52 = vmul.f32 %v1923_v48, %v1390_v49 }
 0x6c3   : > { %v1392_v53 = vmul.f32 0.5, %v1391_v52 }
 0x6c5   : > { %v1393_v55 = vsub.f32 1.5, %v1392_v53 }
 0x6c7   : > { %v1394_v54 = vmul.f32 %v1923_v48, %v1393_v55 }
 0x6c9   : > { %v1398_v57 = vsel %vm1397_vm9, %v1923_v48, %v1394_v54 }
 0x6ca   : > { %v1399_v39 = vmul.f32 %v1398_v57, %v2588_v27 }
 0x6cc   : > { %1404 = vperm.xlu0 %1920, %v1399_v39   ;;  %v1400_v59 = vmul.f32 %v1399_v39, %v1383_v44 }
 0x6ce   : > { %v1401_v62 = vsub.f32 %v2591_v28, %v1400_v59  ;;  %v1418_v28 = vperm.slane %v2585_v26, 0 }
 0x6d0   : > { %1411 = vperm.xlu1 %1921, %v1401_v62  }
 0x73e   : > { %v1405_v2 = vpop.permute.xlu0 %1404 }
 0x73f   : > { %v1407_v4 = vmul.f32 %v1405_v2, %v1366_v18  ;;  %v1408_v5 = vmul.f32 %v1405_v2, %v1367_v33 }
 0x742   : > { %v1412_v7 = vpop.permute.xlu1 %1411 }
 0x743   : > { %v1414_v8 = vadd.f32 %v1412_v7, %v1407_v4  ;;  %v1415_v9 = vadd.f32 %v1412_v7, %v1408_v5 }
 0x745   : > { %v1416_v27 = vpack.c.bf16 %v1415_v9, %v1414_v8 }
 0x747   : > { %1746 = vmatmul.msk.bf16.vlgmr.msrb.gmra.mxu0 %vm774_vm2, %v1416_v27 }
 0x7c4   : > { %v1444_v10 = vpop.f32.mrf.mxu0 }
 0x7c5   : > { %v1445_v11 = vadd.f32 %v1444_v10, %v1418_v28 }
 0x7c7   : > { %1449 = vst.msk [vmem:[#allocation4] sm:$0xff] %vm774_vm2, %v1445_v11 }
 0x7cb   : > { %1453 = sbr.rel (%p1737_p1) target bundleno = 2002 (0x7d2), region = 112 }
 0x7cc   : > { %v1446_v24 = vpop.f32.mrf.mxu0 }
 0x7cd   : > { %v1447_v25 = vadd.f32 %v1446_v24, %v1418_v28 }
 0x7cf   : > { %1450 = vst.msk [vmem:[#allocation4 + $0x8] sm:$0xff] %vm774_vm2, %v1447_v25 }
 0x7d0   : > { %1454 = vst.msk [vmem:[#allocation17] sm:$0xff] %vm774_vm2, %v1445_v11 }
 0x7d1   : > { %1455 = vst.msk [vmem:[#allocation17 + $0x8] sm:$0xff] %vm774_vm2, %v1447_v25 }
 0x7d2 PF: > { %p1831_p3 = scmp.eq.s32.totalorder %s2361_s17, 3  ;;  %s2262_s23 = smov [#allocation17]  }
 0x7d3   : > { %s1461_s14 = sshll.u32 %s2262_s23, 4  ;;  %s2853_s0 = sld [smem:[#allocation35_spill]]  ;;  %s1462_s14 = int_to_ptr.vmem [resolvable:$true] %s1461_s14 }
 0x7d4   : > { %s2263_s4 = smov 128   ;;  %s2264_s28 = smov [#allocation18]  }
 0x7d5   : > { %s1475_s19 = sshll.u32 %s2264_s28, 4  ;;  %s2854_s27 = sld [smem:[#allocation36_spill]]  ;;  %s1476_s19 = int_to_ptr.vmem [resolvable:$true] %s1475_s19 }
 0x7d9   : > { %s1463_s29 = sshll.u32 %s2853_s0, 4  ;;  %s1464_s29 = int_to_ptr.hbm [resolvable:$true] %s1463_s29 }
 0x7da   : > { %1790 = dma.vmem_to_hbm [thread:$0]  (%p1831_p3), %s1462_s14, 256, %s1464_s29, [#allocation7], %s2263_s4, %s2263_s4, %s2258_s18  }
 0x7db   : > { %s1477_s26 = sshll.u32 %s2854_s27, 4  ;;  %s1478_s26 = int_to_ptr.hbm [resolvable:$true] %s1477_s26 }
 0x7dc   : > { %1792 = dma.vmem_to_hbm [thread:$0]  (%p1831_p3), %s1476_s19, 1024, %s1478_s26, [#allocation19], %s2263_s4, %s2263_s4, %s2258_s18  }
 0x7dd   : > { %2223 = dma.done.wait (%p1831_p3), [#allocation7], 256  }
 0x7de   : > { %2225 = vsyncadd (%p1831_p3), [#allocation7], 4294967040 }
 0x7df   : > { %2227 = dma.done.wait (%p1831_p3), [#allocation19], 1024  }
 0x7e0   : > { %2229 = vsyncadd (%p1831_p3), [#allocation19], 4294966272 }
 0x7e1 PF: > { %s2855_s16 = sld [smem:[#allocation27_spill]]  ;;  %s2858_s29 = smov %s2236_s30 }
 0x7e2   : > { %s2856_s1 = sld [smem:[#allocation26_spill]] }
 0x7e3   : > { %s2857_s15 = sld [smem:[#allocation28_spill]] }
 0x7e7   : > { %p30_p6 = scmp.ge.s32.totalorder %s2855_s16, 6  }
 0x7e8   : > { %s2859_s30 = smov %s2856_s1 }
 0x7e9   :  { %32 = sbr.rel (!%p30_p6) target bundleno = 17 (0x11), region = 173 }
 0x7ee   :  { %1499 = vsyncpa [#allocation6], 1 }
 0x7ef   :  { %1501 = vsyncpa [#allocation6 + $0x1], 1 }
 0x7f0   :  { %1502 = vsyncpa [#allocation9], 1 }
 0x7f1   :  { %1503 = vsyncpa [#allocation12], 1 }
 0x7f2   :  { %1504 = vsyncpa [#allocation15], 1 }
 0x7f3   :  { %1506 = vsyncpa [#allocation15 + $0x1], 1 }
 0x7f4   :  { %1507 = vsyncpa [#allocation7], 1 }
 0x7f5   :  { %1509 = vsyncpa [#allocation7 + $0x1], 1 }
 0x7f6   :  { %1510 = vsyncpa [#allocation19], 1 }

</bundles_post_ra>
